<compile_context>
chip_gen: v7x
topology: tpu7x:2x2x1
jax: 0.10.0
libtpu: 0.0.40
codegen_flags: <defaults>
</compile_context>

<pallas_src>
import functools

import jax
import jax.numpy as jnp
from jax import lax
from jax.experimental import pallas as pl
from jax.experimental.pallas import tpu as pltpu


def _vmem_limit_bytes():
    """Scoped-VMEM budget derived from the actual part (v5e/v6e: 128 MiB
    physical, v7x: 64 MiB); conservative fallback if the query fails."""
    try:
        cap = int(pltpu.get_tpu_info().vmem_capacity_bytes)
    except Exception:
        cap = 64 * 1024 * 1024
    return max(32 * 1024 * 1024, min(cap * 3 // 4, 96 * 1024 * 1024))


def _pick_row_tile(ho, wo, target_m=4096):
    """Output-row tile th: a divisor of Ho whose flattened extent th*Wo is a
    multiple of 128 (lane-dense unmasked stores) or covers the full Ho*Wo
    (always legal), targeting ~target_m MXU rows per grid step."""
    cands = [d for d in range(1, ho + 1)
             if ho % d == 0 and ((d * wo) % 128 == 0 or d == ho)]
    fitting = [d for d in cands if d * wo <= max(target_m, wo)]
    return max(fitting) if fitting else min(cands)


def _pick_lane_tile(total, bytes_per_lane, target_bytes=2 << 20):
    """Spatial tile for the mem-bound BN+ReLU pass: a multiple of 128 dividing
    `total` (or the full extent), sized at ~target_bytes per buffer."""
    target = max(128, target_bytes // max(bytes_per_lane, 1))
    cands = [d for d in range(128, total + 1, 128) if total % d == 0]
    if not cands:
        return total
    fitting = [d for d in cands if d <= target]
    return max(fitting) if fitting else min(cands)


# ----------------------------------------------------------------------------
# Kernel 1: direct conv (taps fused into the contraction dim, single MXU
# matmul per tile) + per-tile mean-centered statistics + in-kernel transpose
# to a channels-leading layout.
# ----------------------------------------------------------------------------
def _make_conv_stats_kernel(k, stride, th, wo, cin, cout, cpad, inv_tile_count):
    def kernel(x_ref, w_ref, o_ref, stats_ref):
        # x_ref:     (Hp, Wp, Cin)    bf16  full padded map of this batch elem
        # w_ref:     (K*K*Cin, Cpad)  bf16  taps folded into contraction dim
        # o_ref:     (Cout, th*Wo)    f32   conv tile, channels-leading
        # stats_ref: (8, Cpad)        f32   rows: [sum, centered ssq, 0 ...]
        i = pl.program_id(1)
        row_base = i * (th * stride)

        # Build the im2col patch for this tile: all K*K taps concatenated
        # along the lane (contraction) axis -> ONE matmul with contraction
        # K*K*Cin instead of K*K matmuls with contraction Cin.
        wins = []
        for kh in range(k):
            for kw in range(k):
                if stride == 1:
                    win = x_ref[pl.ds(row_base + kh, th), pl.ds(kw, wo), :]
                else:
                    # strided slice straight from the ref (no load+subsample)
                    win = x_ref[pl.ds(row_base + kh, th, stride=stride),
                                pl.ds(kw, wo, stride=stride), :]
                wins.append(win)
        patch = jnp.concatenate(wins, axis=-1).reshape(th * wo, k * k * cin)

        acc = jnp.dot(patch, w_ref[...], preferred_element_type=jnp.float32)

        # Per-tile mean-centered partial statistics (Chan-combined outside the
        # kernel) -- avoids E[x^2] - mean^2 catastrophic cancellation.
        s = jnp.sum(acc, axis=0, keepdims=True)                  # (1, Cpad)
        mu = s * inv_tile_count
        d = acc - mu
        m2 = jnp.sum(d * d, axis=0, keepdims=True)               # (1, Cpad)
        stats_ref[...] = jnp.concatenate(
            [s, m2, jnp.zeros((6, cpad), jnp.float32)], axis=0)

        # Channels-leading store: spatial is the lane dim (lane-dense), only
        # the real Cout channels are materialized in HBM, and no external
        # NHWC->NCHW transpose pass is needed afterwards.
        o_ref[...] = jnp.transpose(acc)[:cout, :]

    return kernel


# ----------------------------------------------------------------------------
# Kernel 2: fused affine BatchNorm (precomputed scale/shift) + ReLU, written
# in place over the channels-leading conv intermediate.
# ----------------------------------------------------------------------------
def _bn_relu_kernel(x_ref, ss_ref, o_ref):
    # x_ref / o_ref: (Cout, tb) f32 ; ss_ref: (Cout, 128) f32 (col0=scale,
    # col1=shift), broadcast along the lane (spatial) dim.
    ss = ss_ref[...]
    scale = ss[:, 0:1]
    shift = ss[:, 1:2]
    o_ref[...] = jnp.maximum(x_ref[...] * scale + shift, 0.0)


@functools.partial(jax.jit, static_argnames=("kernel_size", "stride", "eps"))
def conv_relu_forward(x_nchw, weight_oihw, gamma, beta, kernel_size, stride,
                      eps=1e-5):
    """Forward pass of ConvRelu (PyTorch module in training mode: BatchNorm
    normalizes with biased batch statistics). Returns NCHW f32."""
    n, cin, h, w = x_nchw.shape
    cout = weight_oihw.shape[0]
    k, s = kernel_size, stride
    pad = (k - 1) // 2
    ho = (h + 2 * pad - k) // s + 1
    wo = (w + 2 * pad - k) // s + 1
    hp, wp = h + 2 * pad, w + 2 * pad
    cpad = 128 * pl.cdiv(cout, 128)       # lane-dense Cout for the MXU N dim
    kkcin = k * k * cin
    howo = ho * wo

    # NCHW -> NHWC, spatial zero-pad, bf16 MXU operand (no im2col in HBM).
    xp = jnp.pad(jnp.transpose(x_nchw, (0, 2, 3, 1)),
                 ((0, 0), (pad, pad), (pad, pad), (0, 0))).astype(jnp.bfloat16)
    # (Cout, Cin, K, K) -> (K, K, Cin, Cout) -> (K*K*Cin, Cpad) bf16.
    # Row order (kh, kw, cin) matches the in-kernel patch construction.
    wt = jnp.transpose(weight_oihw, (2, 3, 1, 0)).reshape(kkcin, cout)
    wt = jnp.pad(wt, ((0, 0), (0, cpad - cout))).astype(jnp.bfloat16)

    th = _pick_row_tile(ho, wo, target_m=4096)
    n_t = ho // th

    cparams = pltpu.CompilerParams(
        dimension_semantics=("parallel", "parallel"),
        vmem_limit_bytes=_vmem_limit_bytes())

    conv_kernel = _make_conv_stats_kernel(k, s, th, wo, cin, cout, cpad,
                                          1.0 / float(th * wo))

    conv_out, part = pl.pallas_call(
        conv_kernel,
        out_shape=(
            jax.ShapeDtypeStruct((n, cout, howo), jnp.float32),
            jax.ShapeDtypeStruct((n, n_t, 8, cpad), jnp.float32),
        ),
        grid_spec=pltpu.PrefetchScalarGridSpec(
            num_scalar_prefetch=0,
            grid=(n, n_t),
            in_specs=[
                # Full padded feature map per batch element (re-DMA'd only
                # when the batch index changes); weights resident across grid.
                pl.BlockSpec((None, hp, wp, cin), lambda b, i: (b, 0, 0, 0)),
                pl.BlockSpec((kkcin, cpad), lambda b, i: (0, 0)),
            ],
            out_specs=[
                pl.BlockSpec((None, cout, th * wo), lambda b, i: (b, 0, i)),
                pl.BlockSpec((None, None, 8, cpad), lambda b, i: (b, i, 0, 0)),
            ],
        ),
        compiler_params=cparams,
    )(xp, wt)

    # Combine per-tile mean-centered partials (Chan) -> batch mean/var, then
    # fold gamma/beta into a single scale/shift per channel.
    tile_count = jnp.float32(th * wo)
    total = jnp.float32(n * ho * wo)
    tile_sum = part[:, :, 0, :]                       # (n, n_t, cpad)
    tile_m2 = part[:, :, 1, :]
    mean = jnp.sum(tile_sum, axis=(0, 1)) / total
    tile_mean = tile_sum / tile_count
    m2 = (jnp.sum(tile_m2, axis=(0, 1))
          + tile_count * jnp.sum((tile_mean - mean) ** 2, axis=(0, 1)))
    var = jnp.maximum(m2 / total, 0.0)

    inv_std = lax.rsqrt(var[:cout] + jnp.float32(eps))
    scale = gamma.astype(jnp.float32) * inv_std
    shift = beta.astype(jnp.float32) - mean[:cout] * scale
    sc_sh = jnp.zeros((cout, 128), jnp.float32)
    sc_sh = sc_sh.at[:, 0].set(scale).at[:, 1].set(shift)

    # Mem-bound epilogue: big spatial tiles, independent of the conv tiling.
    tb = _pick_lane_tile(howo, bytes_per_lane=cout * 4, target_bytes=2 << 20)
    n_b = howo // tb

    y = pl.pallas_call(
        _bn_relu_kernel,
        out_shape=jax.ShapeDtypeStruct((n, cout, howo), jnp.float32),
        grid_spec=pltpu.PrefetchScalarGridSpec(
            num_scalar_prefetch=0,
            grid=(n, n_b),
            in_specs=[
                pl.BlockSpec((None, cout, tb), lambda b, j: (b, 0, j)),
                pl.BlockSpec((cout, 128), lambda b, j: (0, 0)),
            ],
            out_specs=pl.BlockSpec((None, cout, tb), lambda b, j: (b, 0, j)),
        ),
        input_output_aliases={0: 0},      # BN+ReLU in place over conv_out
        compiler_params=cparams,
    )(conv_out, sc_sh)

    # Already NCHW (channels-leading); reshape is a free metadata op.
    return y.reshape(n, cout, ho, wo)


def _reference(x_nchw, weight_oihw, gamma, beta, kernel_size, stride, eps=1e-5):
    """Pure-JAX reference with the same operand precision as the kernel
    (bf16 conv operands, f32 accumulation, f32 batch statistics)."""
    pad = (kernel_size - 1) // 2
    conv = lax.conv_general_dilated(
        x_nchw.astype(jnp.bfloat16), weight_oihw.astype(jnp.bfloat16),
        window_strides=(stride, stride),
        padding=[(pad, pad), (pad, pad)],
        dimension_numbers=("NCHW", "OIHW", "NCHW"),
        preferred_element_type=jnp.float32)
    mean = jnp.mean(conv, axis=(0, 2, 3), keepdims=True)
    var = jnp.mean((conv - mean) ** 2, axis=(0, 2, 3), keepdims=True)
    g = gamma.reshape(1, -1, 1, 1)
    bta = beta.reshape(1, -1, 1, 1)
    return jnp.maximum((conv - mean) * lax.rsqrt(var + eps) * g + bta, 0.0)


if __name__ == "__main__":
    # ConvRelu(in_channels=4, out_channels=8, kernel_size=3, stride=1)
    N, CIN, H, W = 2, 4, 16, 16
    COUT, K, STRIDE = 8, 3, 1

    key = jax.random.PRNGKey(0)
    kx, kwt, kg, kb = jax.random.split(key, 4)
    x = jax.random.normal(kx, (N, CIN, H, W), dtype=jnp.float32)
    weight = 0.1 * jax.random.normal(kwt, (COUT, CIN, K, K), dtype=jnp.float32)
    gamma = 1.0 + 0.1 * jax.random.normal(kg, (COUT,), dtype=jnp.float32)
    beta = 0.1 * jax.random.normal(kb, (COUT,), dtype=jnp.float32)

    out = conv_relu_forward(x, weight, gamma, beta, K, STRIDE)
    out = jax.block_until_ready(out)

    ref = _reference(x, weight, gamma, beta, K, STRIDE)
    assert out.shape == (N, COUT, H, W)
    assert jnp.allclose(out, ref, atol=1e-3, rtol=1e-3), \
        float(jnp.max(jnp.abs(out - ref)))
    print("KERNEL_OK")
</pallas_src>

<mosaic_0001>
module attributes {stable_mosaic.version = 11 : i64} {
  func.func @kernel(%arg0: i32, %arg1: i32, %arg2: memref<1x18x18x4xbf16, #tpu.memory_space<vmem>>, %arg3: memref<36x128xbf16, #tpu.memory_space<vmem>>, %arg4: memref<1x8x256xf32, #tpu.memory_space<vmem>>, %arg5: memref<1x1x8x128xf32, #tpu.memory_space<vmem>>) attributes {dimension_semantics = [#tpu.dimension_semantics<parallel>, #tpu.dimension_semantics<parallel>], iteration_bounds = array<i64: 2, 1>, scalar_prefetch = 0 : i64, scratch_operands = 0 : i64, tpu.core_type = #tpu.core_type<tc>, window_params = [{transform_indices = @transform_0, window_bounds = array<i64: 1, 18, 18, 4>}, {pipeline_mode = #tpu.pipeline_mode<synchronous>, transform_indices = @transform_1, window_bounds = array<i64: 36, 128>}, {transform_indices = @transform_2, window_bounds = array<i64: 1, 8, 256>}, {transform_indices = @transform_3, window_bounds = array<i64: 1, 1, 8, 128>}]} {
    %c16_i32 = arith.constant 16 : i32
    %0 = arith.muli %arg1, %c16_i32 : i32
    %c0_i32 = arith.constant 0 : i32
    %1 = arith.addi %0, %c0_i32 : i32
    %c0 = arith.constant 0 : index
    %2 = arith.index_cast %1 : i32 to index
    %c0_0 = arith.constant 0 : index
    %c0_1 = arith.constant 0 : index
    %3 = vector.load %arg2[%c0, %2, %c0_0, %c0_1] : memref<1x18x18x4xbf16, #tpu.memory_space<vmem>>, vector<1x16x16x4xbf16>
    %4 = vector.shape_cast %3 : vector<1x16x16x4xbf16> to vector<16x16x4xbf16>
    %c0_i32_2 = arith.constant 0 : i32
    %5 = arith.addi %0, %c0_i32_2 : i32
    %c0_3 = arith.constant 0 : index
    %6 = arith.index_cast %5 : i32 to index
    %c1 = arith.constant 1 : index
    %c0_4 = arith.constant 0 : index
    %7 = vector.load %arg2[%c0_3, %6, %c1, %c0_4] : memref<1x18x18x4xbf16, #tpu.memory_space<vmem>>, vector<1x16x16x4xbf16>
    %8 = vector.shape_cast %7 : vector<1x16x16x4xbf16> to vector<16x16x4xbf16>
    %c0_i32_5 = arith.constant 0 : i32
    %9 = arith.addi %0, %c0_i32_5 : i32
    %c0_6 = arith.constant 0 : index
    %10 = arith.index_cast %9 : i32 to index
    %c2 = arith.constant 2 : index
    %c0_7 = arith.constant 0 : index
    %11 = vector.load %arg2[%c0_6, %10, %c2, %c0_7] : memref<1x18x18x4xbf16, #tpu.memory_space<vmem>>, vector<1x16x16x4xbf16>
    %12 = vector.shape_cast %11 : vector<1x16x16x4xbf16> to vector<16x16x4xbf16>
    %c1_i32 = arith.constant 1 : i32
    %13 = arith.addi %0, %c1_i32 : i32
    %c0_8 = arith.constant 0 : index
    %14 = arith.index_cast %13 : i32 to index
    %c0_9 = arith.constant 0 : index
    %c0_10 = arith.constant 0 : index
    %15 = vector.load %arg2[%c0_8, %14, %c0_9, %c0_10] : memref<1x18x18x4xbf16, #tpu.memory_space<vmem>>, vector<1x16x16x4xbf16>
    %16 = vector.shape_cast %15 : vector<1x16x16x4xbf16> to vector<16x16x4xbf16>
    %c1_i32_11 = arith.constant 1 : i32
    %17 = arith.addi %0, %c1_i32_11 : i32
    %c0_12 = arith.constant 0 : index
    %18 = arith.index_cast %17 : i32 to index
    %c1_13 = arith.constant 1 : index
    %c0_14 = arith.constant 0 : index
    %19 = vector.load %arg2[%c0_12, %18, %c1_13, %c0_14] : memref<1x18x18x4xbf16, #tpu.memory_space<vmem>>, vector<1x16x16x4xbf16>
    %20 = vector.shape_cast %19 : vector<1x16x16x4xbf16> to vector<16x16x4xbf16>
    %c1_i32_15 = arith.constant 1 : i32
    %21 = arith.addi %0, %c1_i32_15 : i32
    %c0_16 = arith.constant 0 : index
    %22 = arith.index_cast %21 : i32 to index
    %c2_17 = arith.constant 2 : index
    %c0_18 = arith.constant 0 : index
    %23 = vector.load %arg2[%c0_16, %22, %c2_17, %c0_18] : memref<1x18x18x4xbf16, #tpu.memory_space<vmem>>, vector<1x16x16x4xbf16>
    %24 = vector.shape_cast %23 : vector<1x16x16x4xbf16> to vector<16x16x4xbf16>
    %c2_i32 = arith.constant 2 : i32
    %25 = arith.addi %0, %c2_i32 : i32
    %c0_19 = arith.constant 0 : index
    %26 = arith.index_cast %25 : i32 to index
    %c0_20 = arith.constant 0 : index
    %c0_21 = arith.constant 0 : index
    %27 = vector.load %arg2[%c0_19, %26, %c0_20, %c0_21] : memref<1x18x18x4xbf16, #tpu.memory_space<vmem>>, vector<1x16x16x4xbf16>
    %28 = vector.shape_cast %27 : vector<1x16x16x4xbf16> to vector<16x16x4xbf16>
    %c2_i32_22 = arith.constant 2 : i32
    %29 = arith.addi %0, %c2_i32_22 : i32
    %c0_23 = arith.constant 0 : index
    %30 = arith.index_cast %29 : i32 to index
    %c1_24 = arith.constant 1 : index
    %c0_25 = arith.constant 0 : index
    %31 = vector.load %arg2[%c0_23, %30, %c1_24, %c0_25] : memref<1x18x18x4xbf16, #tpu.memory_space<vmem>>, vector<1x16x16x4xbf16>
    %32 = vector.shape_cast %31 : vector<1x16x16x4xbf16> to vector<16x16x4xbf16>
    %c2_i32_26 = arith.constant 2 : i32
    %33 = arith.addi %0, %c2_i32_26 : i32
    %c0_27 = arith.constant 0 : index
    %34 = arith.index_cast %33 : i32 to index
    %c2_28 = arith.constant 2 : index
    %c0_29 = arith.constant 0 : index
    %35 = vector.load %arg2[%c0_27, %34, %c2_28, %c0_29] : memref<1x18x18x4xbf16, #tpu.memory_space<vmem>>, vector<1x16x16x4xbf16>
    %36 = vector.shape_cast %35 : vector<1x16x16x4xbf16> to vector<16x16x4xbf16>
    %37 = tpu.concatenate %4, %8, %12, %16, %20, %24, %28, %32, %36 in 2 : vector<16x16x4xbf16>, vector<16x16x4xbf16>, vector<16x16x4xbf16>, vector<16x16x4xbf16>, vector<16x16x4xbf16>, vector<16x16x4xbf16>, vector<16x16x4xbf16>, vector<16x16x4xbf16>, vector<16x16x4xbf16> -> vector<16x16x36xbf16>
    %38 = vector.shape_cast %37 : vector<16x16x36xbf16> to vector<256x36xbf16>
    %c0_30 = arith.constant 0 : index
    %c0_31 = arith.constant 0 : index
    %39 = vector.load %arg3[%c0_30, %c0_31] : memref<36x128xbf16, #tpu.memory_space<vmem>>, vector<36x128xbf16>
    %cst = arith.constant dense<0.000000e+00> : vector<256x128xf32>
    %40 = tpu.matmul %38, %39, %cst {dimension_numbers = #tpu.dot_dimension_numbers<[1], [0], [0], [1], [0, 0, 1, 1], [], []>} : vector<256x36xbf16>, vector<36x128xbf16>, vector<256x128xf32> -> vector<256x128xf32>
    %cst_32 = arith.constant dense<0.000000e+00> : vector<128xf32>
    %41 = vector.multi_reduction <add>, %40, %cst_32 [0] : vector<256x128xf32> to vector<128xf32>
    %42 = vector.shape_cast %41 : vector<128xf32> to vector<1x128xf32>
    %cst_33 = arith.constant 3.906250e-03 : f32
    %43 = vector.broadcast %cst_33 : f32 to vector<1x128xf32>
    %44 = arith.mulf %42, %43 : vector<1x128xf32>
    %45 = vector.broadcast %44 : vector<1x128xf32> to vector<256x128xf32>
    %46 = arith.subf %40, %45 : vector<256x128xf32>
    %47 = arith.mulf %46, %46 : vector<256x128xf32>
    %cst_34 = arith.constant dense<0.000000e+00> : vector<128xf32>
    %48 = vector.multi_reduction <add>, %47, %cst_34 [0] : vector<256x128xf32> to vector<128xf32>
    %49 = vector.shape_cast %48 : vector<128xf32> to vector<1x128xf32>
    %cst_35 = arith.constant 0.000000e+00 : f32
    %50 = vector.broadcast %cst_35 : f32 to vector<6x128xf32>
    %51 = tpu.concatenate %42, %49, %50 in 0 : vector<1x128xf32>, vector<1x128xf32>, vector<6x128xf32> -> vector<8x128xf32>
    %c0_36 = arith.constant 0 : index
    %c0_37 = arith.constant 0 : index
    %c0_38 = arith.constant 0 : index
    %c0_39 = arith.constant 0 : index
    %52 = vector.load %arg5[%c0_36, %c0_37, %c0_38, %c0_39] : memref<1x1x8x128xf32, #tpu.memory_space<vmem>>, vector<1x1x8x128xf32>
    %53 = vector.shape_cast %52 : vector<1x1x8x128xf32> to vector<8x128xf32>
    %54 = vector.shape_cast %51 : vector<8x128xf32> to vector<1x1x8x128xf32>
    tpu.vector_store %arg5[%c0_36, %c0_37, %c0_38, %c0_39], %54 {strides = array<i32>} : memref<1x1x8x128xf32, #tpu.memory_space<vmem>>, vector<1x1x8x128xf32>,
    %55 = tpu.transpose %40, [1, 0] : vector<256x128xf32> -> vector<128x256xf32>
    %56 = vector.extract_strided_slice %55 {offsets = [0, 0], sizes = [8, 256], strides = [1, 1]} : vector<128x256xf32> to vector<8x256xf32>
    %c0_40 = arith.constant 0 : index
    %c0_41 = arith.constant 0 : index
    %c0_42 = arith.constant 0 : index
    %57 = vector.load %arg4[%c0_40, %c0_41, %c0_42] : memref<1x8x256xf32, #tpu.memory_space<vmem>>, vector<1x8x256xf32>
    %58 = vector.shape_cast %57 : vector<1x8x256xf32> to vector<8x256xf32>
    %59 = vector.shape_cast %56 : vector<8x256xf32> to vector<1x8x256xf32>
    tpu.vector_store %arg4[%c0_40, %c0_41, %c0_42], %59 {strides = array<i32>} : memref<1x8x256xf32, #tpu.memory_space<vmem>>, vector<1x8x256xf32>,
    return
  }
  func.func @transform_0(%arg0: i32, %arg1: i32) -> (i32, i32, i32, i32) {
    %c0_i32 = arith.constant 0 : i32
    %c0_i32_0 = arith.constant 0 : i32
    %c0_i32_1 = arith.constant 0 : i32
    %c0_i32_2 = arith.constant 0 : i32
    return %arg0, %c0_i32, %c0_i32_0, %c0_i32_1 : i32, i32, i32, i32
  }
  func.func @transform_1(%arg0: i32, %arg1: i32) -> (i32, i32) {
    %c0_i32 = arith.constant 0 : i32
    %c0_i32_0 = arith.constant 0 : i32
    %c0_i32_1 = arith.constant 0 : i32
    return %c0_i32, %c0_i32_0 : i32, i32
  }
  func.func @transform_2(%arg0: i32, %arg1: i32) -> (i32, i32, i32) {
    %c0_i32 = arith.constant 0 : i32
    %c0_i32_0 = arith.constant 0 : i32
    return %arg0, %c0_i32, %arg1 : i32, i32, i32
  }
  func.func @transform_3(%arg0: i32, %arg1: i32) -> (i32, i32, i32, i32) {
    %c0_i32 = arith.constant 0 : i32
    %c0_i32_0 = arith.constant 0 : i32
    %c0_i32_1 = arith.constant 0 : i32
    return %arg0, %arg1, %c0_i32, %c0_i32_0 : i32, i32, i32, i32
  }
}

module attributes {stable_mosaic.version = 11 : i64} {
  func.func @_bn_relu_kernel(%arg0: i32, %arg1: i32, %arg2: memref<1x8x256xf32, #tpu.memory_space<vmem>>, %arg3: memref<8x128xf32, #tpu.memory_space<vmem>>, %arg4: memref<1x8x256xf32, #tpu.memory_space<vmem>>) attributes {dimension_semantics = [#tpu.dimension_semantics<parallel>, #tpu.dimension_semantics<parallel>], iteration_bounds = array<i64: 2, 1>, scalar_prefetch = 0 : i64, scratch_operands = 0 : i64, tpu.core_type = #tpu.core_type<tc>, window_params = [{transform_indices = @transform_0, window_bounds = array<i64: 1, 8, 256>}, {pipeline_mode = #tpu.pipeline_mode<synchronous>, transform_indices = @transform_1, window_bounds = array<i64: 8, 128>}, {transform_indices = @transform_2, window_bounds = array<i64: 1, 8, 256>}]} {
    %c0 = arith.constant 0 : index
    %c0_0 = arith.constant 0 : index
    %0 = vector.load %arg3[%c0, %c0_0] : memref<8x128xf32, #tpu.memory_space<vmem>>, vector<8x128xf32>
    %1 = vector.extract_strided_slice %0 {offsets = [0, 0], sizes = [8, 1], strides = [1, 1]} : vector<8x128xf32> to vector<8x1xf32>
    %2 = vector.extract_strided_slice %0 {offsets = [0, 1], sizes = [8, 1], strides = [1, 1]} : vector<8x128xf32> to vector<8x1xf32>
    %c0_1 = arith.constant 0 : index
    %c0_2 = arith.constant 0 : index
    %c0_3 = arith.constant 0 : index
    %3 = vector.load %arg2[%c0_1, %c0_2, %c0_3] : memref<1x8x256xf32, #tpu.memory_space<vmem>>, vector<1x8x256xf32>
    %4 = vector.shape_cast %3 : vector<1x8x256xf32> to vector<8x256xf32>
    %5 = vector.broadcast %1 : vector<8x1xf32> to vector<8x256xf32>
    %6 = arith.mulf %4, %5 : vector<8x256xf32>
    %7 = vector.broadcast %2 : vector<8x1xf32> to vector<8x256xf32>
    %8 = arith.addf %6, %7 : vector<8x256xf32>
    %cst = arith.constant 0.000000e+00 : f32
    %9 = vector.broadcast %cst : f32 to vector<8x256xf32>
    %10 = arith.maximumf %8, %9 : vector<8x256xf32>
    %c0_4 = arith.constant 0 : index
    %c0_5 = arith.constant 0 : index
    %c0_6 = arith.constant 0 : index
    %11 = vector.load %arg4[%c0_4, %c0_5, %c0_6] : memref<1x8x256xf32, #tpu.memory_space<vmem>>, vector<1x8x256xf32>
    %12 = vector.shape_cast %11 : vector<1x8x256xf32> to vector<8x256xf32>
    %13 = vector.shape_cast %10 : vector<8x256xf32> to vector<1x8x256xf32>
    tpu.vector_store %arg4[%c0_4, %c0_5, %c0_6], %13 {strides = array<i32>} : memref<1x8x256xf32, #tpu.memory_space<vmem>>, vector<1x8x256xf32>,
    return
  }
  func.func @transform_0(%arg0: i32, %arg1: i32) -> (i32, i32, i32) {
    %c0_i32 = arith.constant 0 : i32
    %c0_i32_0 = arith.constant 0 : i32
    return %arg0, %c0_i32, %arg1 : i32, i32, i32
  }
  func.func @transform_1(%arg0: i32, %arg1: i32) -> (i32, i32) {
    %c0_i32 = arith.constant 0 : i32
    %c0_i32_0 = arith.constant 0 : i32
    %c0_i32_1 = arith.constant 0 : i32
    return %c0_i32, %c0_i32_0 : i32, i32
  }
  func.func @transform_2(%arg0: i32, %arg1: i32) -> (i32, i32, i32) {
    %c0_i32 = arith.constant 0 : i32
    %c0_i32_0 = arith.constant 0 : i32
    return %arg0, %c0_i32, %arg1 : i32, i32, i32
  }
}

</mosaic_0001>

<bundles_post_ra>
// kernel: conv_relu_forward.3
= control target key start
LH: loop header
LB: loop body
LE: loop exit
PB: predicated region body
PF: predicated region fallthrough
CT: control target
= control target key end

     0   :  { %s372_s9 = smov 0   ;;  %s374_s10 = smov 0   ;;  %s408_s0 = inlined_call_operand.vmem [shape: f32[2,8,256], index: 0, kind: input, shape index: {}, may-alias: {0,2}]   ;;  %s409_s1 = inlined_call_operand.vmem [shape: f32[8,128], index: 1, kind: input, shape index: {}]   ;;  %s410_s2 = inlined_call_operand.vmem [shape: f32[2,8,256], index: 2, kind: output, shape index: {}, may-alias: {0,2}]  }
   0x1   :  { %s376_s11 = smov 0  }
   0x2 LB: > { %s24_s12 = sadd.s32 1, %s349_s10  ;;  %p294_p0 = scmp.ge.s32.totalorder %s353_s11, 1  ;;  %s353_s11 = sphi %s376_s11, %s12_s11   ;;  %s349_s10 = sphi %s374_s10, %s412_s10   ;;  %s345_s9 = sphi %s372_s9, %s411_s9  }
   0x3   : > { %p26_p1 = scmp.ge.s32.totalorder %s24_s12, 2  ;;  %p133_p2 = scmp.lt.s32.totalorder %s353_s11, 3 }
   0x5   : > { %s414_s12 = smov (%p26_p1, %s24_s12), 0  ;;  %p134_p3 = pnand %p294_p0, %p133_p2 }
   0x6   : > { %v183_v0 = vld [vmem:[%s409_s1] sm:$0xff] (!%p134_p3)  ;;  %v355_v1 = vmov (!%p134_p3), 0   ;;  %v356_v2 = vmov (!%p134_p3), 1   ;;  %p164_p4 = scmp.lt.s32.totalorder (!%p134_p3), %s345_s9, 1 }
   0x7   : > { %137 = sbr.rel (%p134_p3) target bundleno = 146 (0x92), region = 28  ;;  %329 = vset.pattern.permute.xlu0 (!%p134_p3), %v355_v1 }
   0x8   : > { %188 = vperm.xlu0 (!%p134_p3), %329, %v183_v0  }
   0xc   : > { %330 = vset.pattern.permute.xlu0 (!%p134_p3), %v356_v2 }
   0xd   : > { %194 = vperm.xlu0 (!%p134_p3), %330, %v183_v0  }
   0xe   : > { %s416_s9 = smov (!%p164_p4, %s345_s9), 1 }
   0xf   : > { %s301_s15 = sshll.u32 %s416_s9, 4 }
  0x10   : > { %s171_s18 = scalar_lea.vmem %s408_s0, %s301_s15  ;;  %s181_s21 = scalar_lea.vmem %s410_s2, %s301_s15 }
  0x11   : > { %v184_v4 = vld [vmem:[%s171_s18] sm:$0xff]  ;;  %v185_v5 = vld [vmem:[%s171_s18 + $0x8] sm:$0xff] }
  0x87   : > { %v189_v3 = vpop.permute.xlu0 %188 }
  0x88   : > { %v191_v6 = vmul.f32 %v189_v3, %v184_v4  ;;  %v192_v7 = vmul.f32 %v189_v3, %v185_v5 }
  0x8c   : > { %v195_v8 = vpop.permute.xlu0 %194 }
  0x8d   : > { %v197_v9 = vadd.f32 %v195_v8, %v191_v6  ;;  %v198_v10 = vadd.f32 %v195_v8, %v192_v7 }
  0x8f   : > { %v199_v11 = vmax.f32 %v197_v9, 0.0  ;;  %v200_v12 = vmax.f32 %v198_v10, 0.0 }
  0x91   : > { %201 = vst [vmem:[%s181_s21] sm:$0xff] %v199_v11  ;;  %202 = vst [vmem:[%s181_s21 + $0x8] sm:$0xff] %v200_v12 }
  0x92 PF: > { %s12_s11 = sadd.s32 1, %s353_s11   ;;  %s411_s9 = smov %s349_s10 }
  0x93   : > { %p9_p5 = scmp.ge.s32.totalorder %s12_s11, 4   ;;  %s412_s10 = smov %s414_s12 }
  0x95   :  { %11 = sbr.rel (!%p9_p5) target bundleno = 2 (0x2), region = 58 }

// kernel: conv_relu_forward.2
= control target key start
LH: loop header
LB: loop body
LE: loop exit
PB: predicated region body
PF: predicated region fallthrough
CT: control target
= control target key end

     0   :  { %s3347_s12 = smov 0   ;;  %s3349_s13 = smov 0   ;;  %s4642_s0 = inlined_call_operand.vmem [shape: bf16[2,18,18,4], index: 0, kind: input, shape index: {}]   ;;  %s4643_s1 = inlined_call_operand.vmem [shape: bf16[36,128], index: 1, kind: input, shape index: {}]   ;;  %s4644_s2 = inlined_call_operand.vmem [shape: f32[2,8,256], index: 2, kind: output, shape index: {0}]   ;;  %s4645_s3 = inlined_call_operand.vmem [shape: f32[2,1,8,128], index: 3, kind: output, shape index: {1}]  }
   0x1   :  { %s3351_s14 = smov 0  }
   0x2 LB: > { %s26_s15 = sadd.s32 1, %s3313_s13  ;;  %p2751_p0 = scmp.ge.s32.totalorder %s3317_s14, 1  ;;  %s3317_s14 = sphi %s3351_s14, %s14_s14   ;;  %s3313_s13 = sphi %s3349_s13, %s4647_s13   ;;  %s3309_s12 = sphi %s3347_s12, %s4646_s12  }
   0x3   : > { %p28_p1 = scmp.ge.s32.totalorder %s26_s15, 2  ;;  %p156_p2 = scmp.lt.s32.totalorder %s3317_s14, 3 }
   0x5   : > { %s4649_s15 = smov (%p28_p1, %s26_s15), 0  ;;  %p157_p3 = pnand %p2751_p0, %p156_p2 }
   0x6   : > { %p191_p4 = scmp.lt.s32.totalorder (!%p157_p3), %s3309_s12, 1  ;;  %vm819_vm0 = vcmask (!%p157_p3), 1046528   ;;  %s3319_s20 = smov (!%p157_p3), 12   ;;  %vm546_vm1 = vsmask.f32 (!%p157_p3), 7424  ;;  %v3226_v57 = vld [vmem:[%s4643_s1] sm:$0xff] (!%p157_p3)  }
   0x7   : > { %160 = sbr.rel (%p157_p3) target bundleno = 710 (0x2c6), region = 28  ;;  %s3320_s21 = smov (!%p157_p3), 20   ;;  %3069 = vmatprep.subr.bf16.mxu0 (!%p157_p3), %v3226_v57  ;;  %3107 = vmatprep.subr.bf16.mxu1 (!%p157_p3), %v3226_v57  ;;  %vm2241_vm2 = vcmask (!%p157_p3), 1041408   ;;  %vm1924_vm3 = vcmask (!%p157_p3), 31744   ;;  %vm1957_vm4 = vcmask (!%p157_p3), 64512   ;;  %vm1990_vm5 = vcmask (!%p157_p3), 97280  }
   0x8   : > { %s3321_s22 = smov (!%p157_p3), 8   ;;  %s3322_s25 = smov (!%p157_p3), 4   ;;  %3070 = vmatpush3.bf16.msra.mxu0 (!%p157_p3), %v3226_v57  ;;  %3110 = vmatpush3.bf16.msra.mxu1 (!%p157_p3), %v3226_v57  ;;  %vm2023_vm6 = vcmask (!%p157_p3), 130048   ;;  %vm2056_vm7 = vcmask (!%p157_p3), 162816   ;;  %vm2089_vm8 = vcmask (!%p157_p3), 195584   ;;  %vm2122_vm9 = vcmask (!%p157_p3), 228352  }
   0x9   : > { %s3323_s28 = smov (!%p157_p3), 16   ;;  %s3324_s29 = smov (!%p157_p3), 24   ;;  %vm2155_vm10 = vcmask (!%p157_p3), 261120   ;;  %vm2208_vm11 = vcmask (!%p157_p3), 293888   ;;  %vm2545_vm12 = vcmask (!%p157_p3), 1040384  }
   0xa   : > { %s3325_s30 = smov (!%p157_p3), 28   ;;  %s3326_s4 = smov (!%p157_p3), 32  }
   0xe   : > { %s4651_s12 = smov (!%p191_p4, %s3309_s12), 1 }
   0xf   : > { %s3115_s16 = smul.u32 216, %s4651_s12  ;;  %s3049_s7 = sshll.u32 %s4651_s12, 4 }
  0x10   : > { %s4538_s10 = scalar_lea.vmem %s4644_s2, %s3049_s7  ;;  %s2755_s11 = sshll.u32 %s4651_s12, 3 }
  0x11   : > { %s3371_s19 = scalar_lea.vmem %s4642_s0, %s3115_s16  ;;  %s212_s18 = scalar_lea.vmem %s4645_s3, %s2755_s11 }
  0x12   : > { %v2758_v0 = vld [vmem:[%s3371_s19 + $0x18] sm:$0xf]  ;;  %v2759_v1 = vld [vmem:[%s3371_s19 + $0x1c] sm:$0xf]  ;;  %v2756_v5 = vld [vmem:[%s3371_s19 + $0xc] sm:$0xf] }
  0x13   : > { %v2805_v2 = vld [vmem:[%s3371_s19 + $0x18] sm:$0xe]  ;;  %v3376_v3 = vcombine.low %v2758_v0, %v2759_v1  ;;  %v2757_v6 = vld [vmem:[%s3371_s19 + $0x10] sm:$0xf]  ;;  %v2804_v7 = vld [vmem:[%s3371_s19 + $0xc] sm:$0xe] }
  0x14   : > { %v2965_v4 = vcombine.low %v2805_v2, %v2759_v1  ;;  %v3381_v8 = vcombine.low %v2756_v5, %v2757_v6  ;;  %v2964_v9 = vcombine.low %v2804_v7, %v2757_v6  ;;  %v3384_v10 = vld [vmem:[%s3371_s19 + $0x14] ss:$0 sps:$4 sm:$0x11]   ;;  %v219_v12 = vld [vmem:[%s3371_s19 + $0x4] sm:$0xf] }
  0x15   : > { %982 = vrot.lane.b32.xlu1 %v3376_v3, %s3319_s20  ;;  %v1075_v11 = vshll.u32 %v3376_v3, 16  ;;  %v1333_v15 = vrot.slane %v3384_v10, 1  ;;  %v266_v16 = vld [vmem:[%s3371_s19] sm:$0xe]  ;;  %v1073_v21 = vshrl.u32 %v3376_v3, 16  ;;  %v1068_v60 = vshll.u32 %v3384_v10, 16 }
  0x16   : > { %980 = vrot.lane.b32.xlu0 %v3381_v8, %s3319_s20  ;;  %v1063_v13 = vshll.u32 %v3381_v8, 16  ;;  %v1332_v14 = vrot.slane %v2964_v9, 1  ;;  %v1335_v17 = vrot.slane %v2965_v4, 1  ;;  %v3153_v18 = vld [vmem:[%s3371_s19 + $0x8] ss:$0 sps:$4 sm:$0x11]   ;;  %v2916_v19 = vcombine.low %v266_v16, %v219_v12 }
  0x17   : > { %v218_v20 = vld [vmem:[%s3371_s19] sm:$0xf]  ;;  %v220_v24 = vld [vmem:[%s3371_s19 + $0xc] sm:$0xf]  ;;  %v221_v25 = vld [vmem:[%s3371_s19 + $0x10] sm:$0xf] }
  0x18   : > { %v1334_v22 = vsel %vm819_vm0, %v1332_v14, %v1333_v15  ;;  %v3399_v23 = vcombine.low %v218_v20, %v219_v12  ;;  %v820_v26 = vrot.slane %v2916_v19, 1  ;;  %v821_v27 = vrot.slane %v3153_v18, 1  ;;  %v267_v28 = vld [vmem:[%s3371_s19 + $0xc] sm:$0xe]  ;;  %v2822_v43 = vld [vmem:[%s3371_s19 + $0x24] sm:$0xf] }
  0x19   : > { %v3404_v29 = vcombine.low %v220_v24, %v221_v25  ;;  %v555_v30 = vshll.u32 %v3153_v18, 16  ;;  %v3157_v31 = vld [vmem:[%s3371_s19 + $0x14] ss:$0 sps:$4 sm:$0x11]   ;;  %v2917_v32 = vcombine.low %v267_v28, %v221_v25  ;;  %v1077_v35 = vrot.slane %v1075_v11, 1  ;;  %v3231_v12 = vld [vmem:[%s4643_s1 + $0x8] sm:$0xff]  }
  0x1a   : > { %1380 = vrot.lane.b32.xlu0 %v1334_v22, %s3320_s21  ;;  %v548_v33 = vshrl.u32 %v3399_v23, 16  ;;  %v550_v34 = vshll.u32 %v3399_v23, 16  ;;  %v822_v36 = vsel %vm819_vm0, %v820_v26, %v821_v27  ;;  %v3159_v38 = vld [vmem:[%s3371_s19 + $0x20] ss:$0 sps:$4 sm:$0x11]   ;;  %v824_v40 = vrot.slane %v3157_v31, 1  ;;  %3071 = vmatprep.subr.bf16.mxu0 %v3231_v12 }
  0x1b   : > { %v557_v37 = vrot.slane %v555_v30, 1  ;;  %868 = vrot.lane.b32.xlu1 %v822_v36, %s3321_s22  ;;  %v823_v39 = vrot.slane %v2917_v32, 1  ;;  %v560_v42 = vshrl.u32 %v3404_v29, 16  ;;  %v1336_v44 = vrot.slane %v3159_v38, 1  ;;  %v3417_v48 = vld [vmem:[%s3371_s19 + $0x28] sm:$0xf]  ;;  %3108 = vmatprep.subr.bf16.mxu1 %v3231_v12 }
  0x1c   : > { %v552_v41 = vrot.slane %v550_v34, 1  ;;  %v562_v45 = vshll.u32 %v3404_v29, 16  ;;  %v567_v46 = vshll.u32 %v3157_v31, 16  ;;  %v1080_v47 = vshll.u32 %v3159_v38, 16  ;;  %v2820_v53 = vld [vmem:[%s3371_s19 + $0x18] sm:$0xf]  ;;  %3072 = vmatpush3.bf16.msra.mxu0 %v3231_v12  ;;  %3111 = vmatpush3.bf16.msra.mxu1 %v3231_v12 }
  0x1d   : > { %v825_v49 = vsel %vm819_vm0, %v823_v39, %v824_v40  ;;  %v1061_v51 = vshrl.u32 %v3381_v8, 16  ;;  %v1065_v52 = vrot.slane %v1063_v13, 1  ;;  %v3423_v56 = vld [vmem:[%s3371_s19 + $0x1c] sm:$0xf]  ;;  %v1078_v59 = vor.u32 %v1077_v35, %v1073_v21  ;;  %v2868_v6 = vld [vmem:[%s3371_s19 + $0x18] sm:$0xe] }
  0x1e   : > { %v553_v50 = vor.u32 %v552_v41, %v548_v33  ;;  %v564_v54 = vrot.slane %v562_v45, 1  ;;  %v569_v55 = vrot.slane %v567_v46, 1  ;;  %v2981_v61 = vcombine.low %v2822_v43, %v3417_v48  ;;  %v3436_v2 = vld [vmem:[%s3371_s19 + $0x2c] ss:$0 sps:$4 sm:$0x11]  }
  0x1f   : > { %870 = vrot.lane.b32.xlu1 %v825_v49, %s3321_s22  ;;  %v1337_v62 = vsel %vm819_vm0, %v1335_v17, %v1336_v44  ;;  %v1082_v0 = vrot.slane %v1080_v47, 1  ;;  %v2980_v1 = vcombine.low %v2820_v53, %v3423_v56  ;;  %v1066_v3 = vor.u32 %v1065_v52, %v1061_v51  ;;  %v3440_v7 = vld [vmem:[%s3371_s19 + $0x20] ss:$0 sps:$4 sm:$0x11]   ;;  %v222_v11 = vld [vmem:[%s3371_s19 + $0x18] sm:$0xf] }
  0x20   : > { %v558_v58 = vsel %vm546_vm1, %v553_v50, %v557_v37  ;;  %v565_v63 = vor.u32 %v564_v54, %v560_v42  ;;  %v1070_v4 = vrot.slane %v1068_v60, 1  ;;  %v1587_v5 = vshll.u32 %v2981_v61, 16  ;;  %v3450_v15 = vld [vmem:[%s3371_s19 + $0x1c] sm:$0xf]  ;;  %v224_v24 = vld [vmem:[%s3371_s19 + $0x24] sm:$0xf] }
  0x21   : > { %739 = vrot.lane.b32.xlu0 %v558_v58, %s3322_s25  ;;  %v1575_v9 = vshll.u32 %v2980_v1, 16  ;;  %v1585_v10 = vshrl.u32 %v2981_v61, 16  ;;  %v1592_v14 = vshll.u32 %v3436_v2, 16  ;;  %v1083_v16 = vsel %vm546_vm1, %v1078_v59, %v1082_v0  ;;  %v3458_v19 = vld [vmem:[%s3371_s19 + $0x20] ss:$0 sps:$4 sm:$0x11]  }
  0x22   : > { %v570_v8 = vsel %vm546_vm1, %v565_v63, %v569_v55  ;;  %v1589_v13 = vrot.slane %v1587_v5, 1  ;;  %v1573_v17 = vshrl.u32 %v2980_v1, 16  ;;  %v3455_v18 = vcombine.low %v222_v11, %v3450_v15  ;;  %v225_v25 = vld [vmem:[%s3371_s19 + $0x28] sm:$0xf]  ;;  %v2869_v39 = vld [vmem:[%s3371_s19 + $0x24] sm:$0xe] }
  0x23   : > { %1382 = vrot.lane.b32.xlu1 %v1337_v62, %s3320_s21  ;;  %v1071_v20 = vsel %vm546_vm1, %v1066_v3, %v1070_v4  ;;  %v1577_v21 = vrot.slane %v1575_v9, 1  ;;  %v1580_v22 = vshll.u32 %v3440_v7, 16  ;;  %v3012_v26 = vcombine.low %v2868_v6, %v3423_v56  ;;  %v3169_v35 = vld [vmem:[%s3371_s19 + $0x2c] ss:$0 sps:$4 sm:$0x11]  }
  0x24   : > { %v574_v27 = vshll.u32 %v3455_v18, 16  ;;  %v1590_v28 = vor.u32 %v1589_v13, %v1585_v10  ;;  %v1594_v30 = vrot.slane %v1592_v14, 1  ;;  %v579_v31 = vshll.u32 %v3458_v19, 16  ;;  %v269_v44 = vld [vmem:[%s3371_s19 + $0x24] sm:$0xe] }
  0x25   : > { %741 = vrot.lane.b32.xlu0 %v570_v8, %s3322_s25  ;;  %v3468_v32 = vcombine.low %v224_v24, %v225_v25  ;;  %v572_v33 = vshrl.u32 %v3455_v18, 16  ;;  %v1578_v36 = vor.u32 %v1577_v21, %v1573_v17  ;;  %v1582_v37 = vrot.slane %v1580_v22, 1  ;;  %v268_v50 = vld [vmem:[%s3371_s19 + $0x18] sm:$0xe]  ;;  %v2762_v53 = vld [vmem:[%s3371_s19 + $0x30] sm:$0xf] }
  0x26   : > { %v576_v34 = vrot.slane %v574_v27, 1  ;;  %v1595_v40 = vsel %vm546_vm1, %v1590_v28, %v1594_v30  ;;  %v581_v41 = vrot.slane %v579_v31, 1  ;;  %v1844_v42 = vrot.slane %v3012_v26, 1  ;;  %v2763_v54 = vld [vmem:[%s3371_s19 + $0x34] sm:$0xf] }
  0x27   : > { %1254 = vrot.lane.b32.xlu1 %v1083_v16, %s3323_s28  ;;  %v586_v38 = vshll.u32 %v3468_v32, 16  ;;  %v1845_v43 = vrot.slane %v3440_v7, 1  ;;  %v584_v46 = vshrl.u32 %v3468_v32, 16  ;;  %v591_v49 = vshll.u32 %v3169_v35, 16  ;;  %v2760_v55 = vld [vmem:[%s3371_s19 + $0x24] sm:$0xf] }
  0x28   : > { %v577_v45 = vor.u32 %v576_v34, %v572_v33  ;;  %v3013_v51 = vcombine.low %v2869_v39, %v3417_v48  ;;  %v1583_v52 = vsel %vm546_vm1, %v1578_v36, %v1582_v37  ;;  %v2761_v56 = vld [vmem:[%s3371_s19 + $0x28] sm:$0xf]  ;;  %v2919_v58 = vcombine.low %v269_v44, %v225_v25  ;;  %v3496_v3 = vld [vmem:[%s3371_s19 + $0x38] ss:$0 sps:$4 sm:$0x11]  }
  0x29   : > { %1252 = vrot.lane.b32.xlu0 %v1071_v20, %s3323_s28  ;;  %v588_v47 = vrot.slane %v586_v38, 1  ;;  %v1846_v57 = vsel %vm819_vm0, %v1844_v42, %v1845_v43  ;;  %v2935_v48 = vcombine.low %v2762_v53, %v2763_v54  ;;  %v1848_v63 = vrot.slane %v3436_v2, 1  ;;  %v3177_v11 = vld [vmem:[%s3371_s19 + $0x2c] ss:$0 sps:$4 sm:$0x11]  }
  0x2a   : > { %v582_v59 = vsel %vm546_vm1, %v577_v45, %v581_v41  ;;  %v1847_v62 = vrot.slane %v3013_v51, 1  ;;  %v2918_v0 = vcombine.low %v268_v50, %v3450_v15  ;;  %v829_v5 = vrot.slane %v2919_v58, 1  ;;  %v2807_v12 = vld [vmem:[%s3371_s19 + $0x30] sm:$0xe]  ;;  %v2806_v13 = vld [vmem:[%s3371_s19 + $0x24] sm:$0xe] }
  0x2b   : > { %1494 = vrot.lane.b32.xlu1 %v2981_v61, %s3324_s29  ;;  %v589_v60 = vor.u32 %v588_v47, %v584_v46  ;;  %v593_v61 = vrot.slane %v591_v49, 1  ;;  %v830_v6 = vrot.slane %v3169_v35, 1  ;;  %v1099_v7 = vshll.u32 %v2935_v48, 16  ;;  %v2826_v21 = vld [vmem:[%s3371_s19 + $0x3c] sm:$0xf] }
  0x2c   : > { %v1849_v2 = vsel %vm819_vm0, %v1847_v62, %v1848_v63  ;;  %v826_v8 = vrot.slane %v2918_v0, 1  ;;  %v827_v9 = vrot.slane %v3458_v19, 1  ;;  %v1097_v14 = vshrl.u32 %v2935_v48, 16  ;;  %v3511_v22 = vld [vmem:[%s3371_s19 + $0x40] sm:$0xf] }
  0x2d   : > { %1492 = vrot.lane.b32.xlu0 %v2980_v1, %s3324_s29  ;;  %v2934_v1 = vcombine.low %v2760_v55, %v2761_v56  ;;  %v594_v4 = vsel %vm546_vm1, %v589_v60, %v593_v61  ;;  %v1104_v15 = vshll.u32 %v3496_v3, 16  ;;  %v831_v16 = vsel %vm819_vm0, %v829_v5, %v830_v6  ;;  %v2824_v26 = vld [vmem:[%s3371_s19 + $0x30] sm:$0xf]  ;;  %v2825_v27 = vld [vmem:[%s3371_s19 + $0x34] sm:$0xf] }
  0x2e   : > { %v1101_v17 = vrot.slane %v1099_v7, 1  ;;  %v828_v19 = vsel %vm819_vm0, %v826_v8, %v827_v9  ;;  %v1092_v25 = vshll.u32 %v3177_v11, 16  ;;  %v2967_v28 = vcombine.low %v2807_v12, %v2763_v54  ;;  %v226_v38 = vld [vmem:[%s3371_s19 + $0x30] sm:$0xf]  ;;  %v3521_v39 = vld [vmem:[%s3371_s19 + $0x34] sm:$0xf] }
  0x2f   : > { %1766 = vrot.lane.b32.xlu1 %v1595_v40, %s3325_s30  ;;  %v1087_v10 = vshll.u32 %v2934_v1, 16  ;;  %v1085_v20 = vshrl.u32 %v2934_v1, 16  ;;  %v2966_v30 = vcombine.low %v2806_v13, %v2761_v56  ;;  %v2983_v31 = vcombine.low %v2826_v21, %v3511_v22  ;;  %v3526_v45 = vld [vmem:[%s3371_s19 + $0x44] ss:$0 sps:$4 sm:$0x11]  }
  0x30   : > { %v1102_v33 = vor.u32 %v1101_v17, %v1097_v14  ;;  %v1106_v34 = vrot.slane %v1104_v15, 1  ;;  %v2982_v35 = vcombine.low %v2824_v26, %v2825_v27  ;;  %v1094_v37 = vrot.slane %v1092_v25, 1  ;;  %v3183_v49 = vld [vmem:[%s3371_s19 + $0x38] ss:$0 sps:$4 sm:$0x11]  }
  0x31   : > { %1764 = vrot.lane.b32.xlu0 %v1583_v52, %s3325_s30  ;;  %v1089_v24 = vrot.slane %v1087_v10, 1  ;;  %v1341_v40 = vrot.slane %v2967_v28, 1  ;;  %v1342_v41 = vrot.slane %v3496_v3, 1  ;;  %v1338_v42 = vrot.slane %v2966_v30, 1  ;;  %v228_v52 = vld [vmem:[%s3371_s19 + $0x3c] sm:$0xf] }
  0x32   : > { %v1339_v43 = vrot.slane %v3177_v11, 1  ;;  %v1611_v44 = vshll.u32 %v2983_v31, 16  ;;  %v1107_v46 = vsel %vm546_vm1, %v1102_v33, %v1106_v34  ;;  %v1599_v47 = vshll.u32 %v2982_v35, 16  ;;  %v229_v53 = vld [vmem:[%s3371_s19 + $0x40] sm:$0xf] }
  0x33   : > { %743 = vrot.lane.b32.xlu1 %v582_v59, %s3322_s25  ;;  %v1090_v36 = vor.u32 %v1089_v24, %v1085_v20  ;;  %v3532_v50 = vcombine.low %v226_v38, %v3521_v39  ;;  %v1609_v54 = vshrl.u32 %v2983_v31, 16  ;;  %v1616_v56 = vshll.u32 %v3526_v45, 16  ;;  %v2870_v59 = vld [vmem:[%s3371_s19 + $0x30] sm:$0xe]  ;;  %v271_v24 = vld [vmem:[%s3371_s19 + $0x3c] sm:$0xe] }
  0x34   : > { %v1613_v55 = vrot.slane %v1611_v44, 1  ;;  %v1343_v58 = vsel %vm819_vm0, %v1341_v40, %v1342_v41  ;;  %v3546_v61 = vcombine.low %v228_v52, %v229_v53  ;;  %v1597_v62 = vshrl.u32 %v2982_v35, 16  ;;  %v3187_v8 = vld [vmem:[%s3371_s19 + $0x44] ss:$0 sps:$4 sm:$0x11]  }
  0x35   : > { %1892 = vrot.lane.b32.xlu0 %v1846_v57, %s3326_s4  ;;  %v1095_v51 = vsel %vm546_vm1, %v1090_v36, %v1094_v37  ;;  %v3540_v57 = vld [vmem:[%s3371_s19 + $0x38] ss:$0 sps:$4 sm:$0x11]   ;;  %v598_v60 = vshll.u32 %v3532_v50, 16  ;;  %v1601_v63 = vrot.slane %v1599_v47, 1  ;;  %v1604_v0 = vshll.u32 %v3183_v49, 16 }
  0x36   : > { %v3014_v3 = vcombine.low %v2870_v59, %v2825_v27  ;;  %v1618_v5 = vrot.slane %v1616_v56, 1  ;;  %v603_v6 = vshll.u32 %v3540_v57, 16  ;;  %v596_v7 = vshrl.u32 %v3532_v50, 16  ;;  %v2767_v26 = vld [vmem:[%s3371_s19 + $0x4c] sm:$0xf] }
  0x37   : > { %745 = vrot.lane.b32.xlu1 %v594_v4, %s3322_s25  ;;  %v1614_v4 = vor.u32 %v1613_v55, %v1609_v54  ;;  %v610_v9 = vshll.u32 %v3546_v61, 16  ;;  %v1602_v10 = vor.u32 %v1601_v63, %v1597_v62  ;;  %v1606_v11 = vrot.slane %v1604_v0, 1  ;;  %v270_v27 = vld [vmem:[%s3371_s19 + $0x30] sm:$0xe]  ;;  %v2764_v28 = vld [vmem:[%s3371_s19 + $0x3c] sm:$0xf] }
  0x38   : > { %v605_v14 = vrot.slane %v603_v6, 1  ;;  %v1850_v15 = vrot.slane %v3014_v3, 1  ;;  %v608_v20 = vshrl.u32 %v3546_v61, 16  ;;  %v2765_v30 = vld [vmem:[%s3371_s19 + $0x40] sm:$0xf]  ;;  %v2921_v33 = vcombine.low %v271_v24, %v229_v53 }
  0x39   : > { %1894 = vrot.lane.b32.xlu0 %v1849_v2, %s3326_s4  ;;  %v600_v2 = vrot.slane %v598_v60, 1  ;;  %v1619_v13 = vsel %vm546_vm1, %v1614_v4, %v1618_v5  ;;  %v612_v21 = vrot.slane %v610_v9, 1  ;;  %v1607_v25 = vsel %vm546_vm1, %v1602_v10, %v1606_v11  ;;  %v3195_v53 = vld [vmem:[%s3371_s19 + $0x44] ss:$0 sps:$4 sm:$0x11]  }
  0x3a   : > { %v1854_v40 = vrot.slane %v3526_v45, 1  ;;  %v2920_v41 = vcombine.low %v270_v27, %v3521_v39  ;;  %v835_v44 = vrot.slane %v2921_v33, 1  ;;  %v833_v52 = vrot.slane %v3540_v57, 1  ;;  %v2830_v54 = vld [vmem:[%s3371_s19 + $0x54] sm:$0xf] }
  0x3b   : > { %874 = vrot.lane.b32.xlu1 %v831_v16, %s3321_s22  ;;  %v1851_v16 = vrot.slane %v3183_v49, 1  ;;  %v601_v17 = vor.u32 %v600_v2, %v596_v7  ;;  %v3194_v49 = vld [vmem:[%s3371_s19 + $0x50] ss:$0 sps:$4 sm:$0x11]   ;;  %v3584_v55 = vld [vmem:[%s3371_s19 + $0x58] sm:$0xf] }
  0x3c   : > { %v832_v45 = vrot.slane %v2920_v41, 1  ;;  %v2808_v62 = vld [vmem:[%s3371_s19 + $0x3c] sm:$0xe]  ;;  %v2985_v3 = vcombine.low %v2830_v54, %v3584_v55  ;;  %v2828_v4 = vld [vmem:[%s3371_s19 + $0x48] sm:$0xf] }
  0x3d   : > { %872 = vrot.lane.b32.xlu0 %v828_v19, %s3321_s22  ;;  %v615_v19 = vshll.u32 %v3187_v8, 16  ;;  %v606_v34 = vsel %vm546_vm1, %v601_v17, %v605_v14  ;;  %v1852_v38 = vsel %vm819_vm0, %v1850_v15, %v1851_v16  ;;  %v3594_v5 = vld [vmem:[%s3371_s19 + $0x4c] sm:$0xf]  ;;  %v2968_v7 = vcombine.low %v2808_v62, %v2765_v30  ;;  %v230_v9 = vld [vmem:[%s3371_s19 + $0x48] sm:$0xf] }
  0x3e   : > { %v834_v57 = vsel %vm819_vm0, %v832_v45, %v833_v52  ;;  %v3600_v10 = vld [vmem:[%s3371_s19 + $0x4c] sm:$0xf]  ;;  %v1635_v14 = vshll.u32 %v2985_v3, 16  ;;  %v1348_v16 = vrot.slane %v3194_v49, 1  ;;  %v232_v27 = vld [vmem:[%s3371_s19 + $0x54] sm:$0xf] }
  0x3f   : > { %986 = vrot.lane.b32.xlu1 %v2935_v48, %s3319_s20  ;;  %v1340_v48 = vsel %vm819_vm0, %v1338_v42, %v1339_v43  ;;  %v617_v36 = vrot.slane %v615_v19, 1  ;;  %v2936_v42 = vcombine.low %v2764_v28, %v2765_v30  ;;  %v3605_v17 = vld [vmem:[%s3371_s19 + $0x5c] ss:$0 sps:$4 sm:$0x11]   ;;  %v1344_v19 = vrot.slane %v2968_v7, 1 }
  0x40   : > { %v3613_v24 = vld [vmem:[%s3371_s19 + $0x50] ss:$0 sps:$4 sm:$0x11]   ;;  %v3618_v28 = vld [vmem:[%s3371_s19 + $0x58] sm:$0xf]  ;;  %v1633_v30 = vshrl.u32 %v2985_v3, 16 }
  0x41   : > { %984 = vrot.lane.b32.xlu0 %v2934_v1, %s3319_s20  ;;  %v2871_v1 = vld [vmem:[%s3371_s19 + $0x3c] sm:$0xe]  ;;  %v1111_v39 = vshll.u32 %v2936_v42, 16  ;;  %v1109_v63 = vshrl.u32 %v2936_v42, 16  ;;  %v1640_v33 = vshll.u32 %v3605_v17, 16 }
  0x42   : > { %v3015_v12 = vcombine.low %v2871_v1, %v3511_v22  ;;  %v2766_v22 = vld [vmem:[%s3371_s19 + $0x48] sm:$0xf]  ;;  %v1116_v1 = vshll.u32 %v3195_v53, 16  ;;  %v3205_v52 = vld [vmem:[%s3371_s19 + $0x5c] ss:$0 sps:$4 sm:$0x11]  }
  0x43   : > { %1258 = vrot.lane.b32.xlu1 %v1107_v46, %s3323_s28  ;;  %v2937_v37 = vcombine.low %v2766_v22, %v2767_v26  ;;  %v836_v46 = vrot.slane %v3187_v8, 1  ;;  %v1113_v0 = vrot.slane %v1111_v39, 1  ;;  %v1345_v22 = vrot.slane %v3195_v53, 1  ;;  %v2770_v62 = vld [vmem:[%s3371_s19 + $0x60] sm:$0xf] }
  0x44   : > { %v272_v7 = vld [vmem:[%s3371_s19 + $0x48] sm:$0xe] }
  0x45   : > { %1256 = vrot.lane.b32.xlu0 %v1095_v51, %s3323_s28  ;;  %v1123_v47 = vshll.u32 %v2937_v37, 16  ;;  %v837_v56 = vsel %vm819_vm0, %v835_v44, %v836_v46  ;;  %v1121_v59 = vshrl.u32 %v2937_v37, 16  ;;  %v1114_v11 = vor.u32 %v1113_v0, %v1109_v63  ;;  %v2872_v44 = vld [vmem:[%s3371_s19 + $0x48] sm:$0xe] }
  0x46   : > { %v3016_v53 = vcombine.low %v2872_v44, %v3594_v5 }
  0x47   : > { %1386 = vrot.lane.b32.xlu1 %v1343_v58, %s3320_s21  ;;  %v2809_v58 = vld [vmem:[%s3371_s19 + $0x48] sm:$0xe]  ;;  %v1125_v60 = vrot.slane %v1123_v47, 1  ;;  %v1642_v47 = vrot.slane %v1640_v33, 1 }
  0x48   : > { %v2969_v6 = vcombine.low %v2809_v58, %v2767_v26  ;;  %v3234_v58 = vld [vmem:[%s4643_s1 + $0x10] ss:$0 sps:$4 sm:$0x33]  }
  0x49   : > { %1384 = vrot.lane.b32.xlu0 %v1340_v48, %s3320_s21  ;;  %v1128_v48 = vshll.u32 %v3194_v49, 16  ;;  %v1126_v2 = vor.u32 %v1125_v60, %v1121_v59  ;;  %3113 = vmatprep.subr.msk.bf16.mxu0 %vm2241_vm2, %v3234_v58 }
  0x4a   : > { %v1347_v15 = vrot.slane %v2969_v6, 1  ;;  %v1857_v6 = vrot.slane %v3613_v24, 1  ;;  %3114 = vmatprep.subr.msk.bf16.mxu1 %vm2241_vm2, %v3234_v58 }
  0x4b   : > { %1498 = vrot.lane.b32.xlu1 %v2983_v31, %s3324_s29  ;;  %v1853_v31 = vrot.slane %v3015_v12, 1  ;;  %v1130_v8 = vrot.slane %v1128_v48, 1  ;;  %v1118_v12 = vrot.slane %v1116_v1, 1 }
  0x4d   : > { %1496 = vrot.lane.b32.xlu0 %v2982_v35, %s3324_s29  ;;  %v613_v35 = vor.u32 %v612_v21, %v608_v20  ;;  %v1855_v51 = vsel %vm819_vm0, %v1853_v31, %v1854_v40  ;;  %v3608_v20 = vcombine.low %v230_v9, %v3600_v10  ;;  %v1131_v21 = vsel %vm546_vm1, %v1126_v2, %v1130_v8  ;;  %v2768_v2 = vld [vmem:[%s3371_s19 + $0x54] sm:$0xf]  ;;  %v3662_v8 = vld [vmem:[%s3371_s19 + $0x58] sm:$0xf] }
  0x4e   : > { %v1637_v31 = vrot.slane %v1635_v14, 1  ;;  %v2243_v9 = vsel %vm2241_vm2, %v3234_v58, 0 }
  0x4f   : > { %1770 = vrot.lane.b32.xlu1 %v1619_v13, %s3325_s30  ;;  %v618_v43 = vsel %vm546_vm1, %v613_v35, %v617_v36  ;;  %v2984_v13 = vcombine.low %v2828_v4, %v3594_v5  ;;  %v622_v35 = vshll.u32 %v3608_v20, 16  ;;  %v1349_v36 = vsel %vm819_vm0, %v1347_v15, %v1348_v16  ;;  %v3653_v5 = vld [vmem:[%s3371_s19 + $0x64] sm:$0xf]  ;;  %3074 = vmatpush3.bf16.msra.mxu0 %v2243_v9 }
  0x50   : > { %v1638_v46 = vor.u32 %v1637_v31, %v1633_v30  ;;  %v620_v49 = vshrl.u32 %v3608_v20, 16  ;;  %v639_v4 = vshll.u32 %v3205_v52, 16  ;;  %3112 = vmatpush3.bf16.msra.mxu1 %v2243_v9  ;;  %v3212_v30 = vld [vmem:[%s3371_s19 + $0x68] ss:$0 sps:$4 sm:$0x11]  }
  0x51   : > { %1768 = vrot.lane.b32.xlu0 %v1607_v25, %s3325_s30  ;;  %v1119_v25 = vsel %vm546_vm1, %v1114_v11, %v1118_v12  ;;  %v1623_v26 = vshll.u32 %v2984_v13, 16  ;;  %v1621_v40 = vshrl.u32 %v2984_v13, 16  ;;  %v2939_v12 = vcombine.low %v2770_v62, %v3653_v5  ;;  %v3213_v31 = vld [vmem:[%s3371_s19 + $0x5c] ss:$0 sps:$4 sm:$0x11]  }
  0x52   : > { %v1643_v60 = vsel %vm546_vm1, %v1638_v46, %v1642_v47  ;;  %v641_v15 = vrot.slane %v639_v4, 1  ;;  %v1152_v44 = vshll.u32 %v3212_v30, 16  ;;  %v1140_v46 = vshll.u32 %v3213_v31, 16  ;;  %v3700_v62 = vld [vmem:[%s3371_s19 + $0x64] sm:$0xf] }
  0x53   : > { %747 = vrot.lane.b32.xlu1 %v606_v34, %s3322_s25  ;;  %v3623_v34 = vld [vmem:[%s3371_s19 + $0x50] ss:$0 sps:$4 sm:$0x11]   ;;  %v1625_v41 = vrot.slane %v1623_v26, 1  ;;  %v842_v26 = vrot.slane %v3205_v52, 1 }
  0x54   : > { %v627_v45 = vshll.u32 %v3623_v34, 16  ;;  %v839_v33 = vrot.slane %v3623_v34, 1  ;;  %v2810_v34 = vld [vmem:[%s3371_s19 + $0x54] sm:$0xe]  ;;  %v2832_v52 = vld [vmem:[%s3371_s19 + $0x60] sm:$0xf] }
  0x55   : > { %1896 = vrot.lane.b32.xlu0 %v1852_v38, %s3326_s4  ;;  %v1346_v38 = vsel %vm819_vm0, %v1344_v19, %v1345_v22  ;;  %v1626_v54 = vor.u32 %v1625_v41, %v1621_v40  ;;  %v1860_v19 = vrot.slane %v3605_v17, 1  ;;  %v3685_v40 = vld [vmem:[%s3371_s19 + $0x70] sm:$0xf]  ;;  %v2811_v41 = vld [vmem:[%s3371_s19 + $0x60] sm:$0xe]  ;;  %v1154_v58 = vrot.slane %v1152_v44, 1 }
  0x56   : > { %v629_v48 = vrot.slane %v627_v45, 1  ;;  %v236_v9 = vld [vmem:[%s3371_s19 + $0x6c] sm:$0xf] }
  0x57   : > { %749 = vrot.lane.b32.xlu1 %v618_v43, %s3322_s25  ;;  %v2873_v43 = vld [vmem:[%s3371_s19 + $0x54] sm:$0xe]  ;;  %v2875_v44 = vld [vmem:[%s3371_s19 + $0x6c] sm:$0xe] }
  0x58   : > { %v3017_v59 = vcombine.low %v2873_v43, %v3584_v55 }
  0x59   : > { %1898 = vrot.lane.b32.xlu0 %v1855_v51, %s3326_s4  ;;  %v624_v51 = vrot.slane %v622_v35, 1 }
  0x5a   : > { %v1859_v16 = vrot.slane %v3017_v59, 1  ;;  %v1142_v59 = vrot.slane %v1140_v46, 1 }
  0x5b   : > { %878 = vrot.lane.b32.xlu1 %v837_v56, %s3321_s22  ;;  %v625_v63 = vor.u32 %v624_v51, %v620_v49 }
  0x5d   : > { %876 = vrot.lane.b32.xlu0 %v834_v57, %s3321_s22  ;;  %v273_v57 = vld [vmem:[%s3371_s19 + $0x54] sm:$0xe] }
  0x5e   : > { %v2923_v11 = vcombine.low %v273_v57, %v3618_v28  ;;  %v234_v57 = vld [vmem:[%s3371_s19 + $0x60] sm:$0xf] }
  0x5f   : > { %990 = vrot.lane.b32.xlu1 %v2937_v37, %s3319_s20  ;;  %v3629_v37 = vcombine.low %v232_v27, %v3618_v28  ;;  %v1147_v27 = vshll.u32 %v2939_v12, 16 }
  0x60   : > { %v841_v22 = vrot.slane %v2923_v11, 1  ;;  %v3715_v11 = vld [vmem:[%s3371_s19 + $0x70] sm:$0xf] }
  0x61   : > { %988 = vrot.lane.b32.xlu0 %v2936_v42, %s3319_s20  ;;  %v1628_v42 = vshll.u32 %v3613_v24, 16  ;;  %v634_v39 = vshll.u32 %v3629_v37, 16  ;;  %v632_v0 = vshrl.u32 %v3629_v37, 16  ;;  %v2922_v24 = vcombine.low %v272_v7, %v3600_v10 }
  0x62   : > { %v1861_v10 = vsel %vm819_vm0, %v1859_v16, %v1860_v19  ;;  %v1149_v43 = vrot.slane %v1147_v27, 1 }
  0x63   : > { %1262 = vrot.lane.b32.xlu1 %v1131_v21, %s3323_s28  ;;  %v1630_v56 = vrot.slane %v1628_v42, 1  ;;  %v636_v1 = vrot.slane %v634_v39, 1  ;;  %v838_v17 = vrot.slane %v2922_v24, 1  ;;  %v1145_v42 = vshrl.u32 %v2939_v12, 16  ;;  %v2833_v39 = vld [vmem:[%s3371_s19 + $0x64] sm:$0xf] }
  0x64   : > { %v3727_v24 = vcombine.low %v236_v9, %v3715_v11 }
  0x65   : > { %1260 = vrot.lane.b32.xlu0 %v1119_v25, %s3323_s28  ;;  %v1631_v55 = vsel %vm546_vm1, %v1626_v54, %v1630_v56  ;;  %v637_v14 = vor.u32 %v636_v1, %v632_v0  ;;  %v2938_v25 = vcombine.low %v2768_v2, %v3662_v8  ;;  %v840_v47 = vsel %vm819_vm0, %v838_v17, %v839_v33  ;;  %v3704_v1 = vld [vmem:[%s3371_s19 + $0x74] ss:$0 sps:$4 sm:$0x11]  }
  0x66   : > { %v2970_v54 = vcombine.low %v2810_v34, %v3662_v8  ;;  %v1150_v56 = vor.u32 %v1149_v43, %v1145_v42  ;;  %v1351_v2 = vrot.slane %v3213_v31, 1  ;;  %v1866_v9 = vrot.slane %v3704_v1, 1 }
  0x67   : > { %1390 = vrot.lane.b32.xlu1 %v1349_v36, %s3320_s21  ;;  %v642_v28 = vsel %vm546_vm1, %v637_v14, %v641_v15  ;;  %v1135_v35 = vshll.u32 %v2938_v25, 16  ;;  %v843_v36 = vsel %vm819_vm0, %v841_v22, %v842_v26  ;;  %v1133_v49 = vshrl.u32 %v2938_v25, 16  ;;  %v3720_v15 = vld [vmem:[%s3371_s19 + $0x68] ss:$0 sps:$4 sm:$0x11]  }
  0x68   : > { %v1155_v4 = vsel %vm546_vm1, %v1150_v56, %v1154_v58  ;;  %v1664_v14 = vshll.u32 %v3704_v1, 16  ;;  %v651_v33 = vshll.u32 %v3720_v15, 16  ;;  %v3019_v58 = vcombine.low %v2875_v44, %v3685_v40 }
  0x69   : > { %1388 = vrot.lane.b32.xlu0 %v1346_v38, %s3320_s21  ;;  %v2834_v38 = vld [vmem:[%s3371_s19 + $0x6c] sm:$0xf]  ;;  %v1137_v51 = vrot.slane %v1135_v35, 1 }
  0x6a   : > { %v2987_v45 = vcombine.low %v2834_v38, %v3685_v40  ;;  %v1666_v17 = vrot.slane %v1664_v14, 1  ;;  %v3223_v38 = vld [vmem:[%s3371_s19 + $0x74] ss:$0 sps:$4 sm:$0x11]  }
  0x6b   : > { %1502 = vrot.lane.b32.xlu1 %v2985_v3, %s3324_s29  ;;  %v1856_v3 = vrot.slane %v3016_v53, 1  ;;  %v2971_v53 = vcombine.low %v2811_v41, %v3653_v5  ;;  %v1354_v5 = vrot.slane %v3212_v30, 1  ;;  %v658_v41 = vshll.u32 %v3727_v24, 16 }
  0x6c   : > { %v663_v56 = vshll.u32 %v3223_v38, 16  ;;  %v848_v14 = vrot.slane %v3223_v38, 1 }
  0x6d   : > { %1500 = vrot.lane.b32.xlu0 %v2984_v13, %s3324_s29  ;;  %v630_v13 = vsel %vm546_vm1, %v625_v63, %v629_v48  ;;  %v1858_v21 = vsel %vm819_vm0, %v1856_v3, %v1857_v6  ;;  %v2986_v48 = vcombine.low %v2832_v52, %v2833_v39  ;;  %v1659_v63 = vshll.u32 %v2987_v45, 16  ;;  %v3219_v3 = vld [vmem:[%s3371_s19 + $0x68] ss:$0 sps:$4 sm:$0x11]  }
  0x6e   : > { %v1353_v0 = vrot.slane %v2971_v53, 1  ;;  %v3710_v6 = vcombine.low %v234_v57, %v3700_v62  ;;  %v1652_v27 = vshll.u32 %v3219_v3, 16  ;;  %v656_v53 = vshrl.u32 %v3727_v24, 16  ;;  %v2774_v57 = vld [vmem:[%s3371_s19 + $0x78] sm:$0xf] }
  0x6f   : > { %1774 = vrot.lane.b32.xlu1 %v1643_v60, %s3325_s30  ;;  %v1138_v60 = vor.u32 %v1137_v51, %v1133_v49  ;;  %v1647_v8 = vshll.u32 %v2986_v48, 16  ;;  %v1645_v22 = vshrl.u32 %v2986_v48, 16  ;;  %v1863_v49 = vrot.slane %v3219_v3, 1  ;;  %v275_v51 = vld [vmem:[%s3371_s19 + $0x6c] sm:$0xe] }
  0x70   : > { %v1355_v16 = vsel %vm819_vm0, %v1353_v0, %v1354_v5  ;;  %v646_v19 = vshll.u32 %v3710_v6, 16  ;;  %v644_v35 = vshrl.u32 %v3710_v6, 16  ;;  %v1654_v43 = vrot.slane %v1652_v27, 1  ;;  %v2772_v0 = vld [vmem:[%s3371_s19 + $0x6c] sm:$0xf] }
  0x71   : > { %1772 = vrot.lane.b32.xlu0 %v1631_v55, %s3325_s30  ;;  %v1350_v55 = vrot.slane %v2970_v54, 1  ;;  %v1143_v7 = vsel %vm546_vm1, %v1138_v60, %v1142_v59  ;;  %v1649_v26 = vrot.slane %v1647_v8, 1  ;;  %v660_v54 = vrot.slane %v658_v41, 1 }
  0x72   : > { %v2925_v5 = vcombine.low %v275_v51, %v3715_v11  ;;  %v665_v3 = vrot.slane %v663_v56, 1  ;;  %v1865_v8 = vrot.slane %v3019_v58, 1  ;;  %v3809_v51 = vld [vmem:[%s3371_s19 + $0x7c] sm:$0xf] }
  0x73   : > { %751 = vrot.lane.b32.xlu1 %v630_v13, %s3322_s25  ;;  %v1661_v13 = vrot.slane %v1659_v63, 1  ;;  %v1650_v42 = vor.u32 %v1649_v26, %v1645_v22  ;;  %v3755_v63 = vld [vmem:[%s3371_s19 + $0x7c] sm:$0xf]  ;;  %v845_v26 = vrot.slane %v3720_v15, 1 }
  0x75   : > { %1900 = vrot.lane.b32.xlu0 %v1858_v21, %s3326_s4  ;;  %v2874_v21 = vld [vmem:[%s3371_s19 + $0x60] sm:$0xe]  ;;  %v1655_v60 = vsel %vm546_vm1, %v1650_v42, %v1654_v43  ;;  %v2838_v42 = vld [vmem:[%s3371_s19 + $0x84] sm:$0xf]  ;;  %v3801_v43 = vld [vmem:[%s3371_s19 + $0x88] sm:$0xf] }
  0x76   : > { %v3018_v31 = vcombine.low %v2874_v21, %v2833_v39 }
  0x77   : > { %753 = vrot.lane.b32.xlu1 %v642_v28, %s3322_s25 }
  0x78   : > { %v1862_v34 = vrot.slane %v3018_v31, 1  ;;  %v3789_v31 = vld [vmem:[%s3371_s19 + $0x74] ss:$0 sps:$4 sm:$0x11]  }
  0x79   : > { %1902 = vrot.lane.b32.xlu0 %v1861_v10, %s3326_s4 }
  0x7b   : > { %882 = vrot.lane.b32.xlu1 %v843_v36, %s3321_s22  ;;  %v648_v36 = vrot.slane %v646_v19, 1  ;;  %v847_v19 = vrot.slane %v2925_v5, 1  ;;  %v238_v5 = vld [vmem:[%s3371_s19 + $0x78] sm:$0xf] }
  0x7d   : > { %880 = vrot.lane.b32.xlu0 %v840_v47, %s3321_s22  ;;  %v653_v47 = vrot.slane %v651_v33, 1  ;;  %v649_v39 = vor.u32 %v648_v36, %v644_v35  ;;  %v2812_v33 = vld [vmem:[%s3371_s19 + $0x6c] sm:$0xe]  ;;  %v849_v15 = vsel %vm819_vm0, %v847_v19, %v848_v14 }
  0x7f   : > { %994 = vrot.lane.b32.xlu1 %v2939_v12, %s3319_s20  ;;  %v1657_v12 = vshrl.u32 %v2987_v45, 16  ;;  %v654_v40 = vsel %vm546_vm1, %v649_v39, %v653_v47 }
  0x81   : > { %992 = vrot.lane.b32.xlu0 %v2938_v25, %s3319_s20  ;;  %v1352_v25 = vsel %vm819_vm0, %v1350_v55, %v1351_v2  ;;  %v1662_v10 = vor.u32 %v1661_v13, %v1657_v12  ;;  %v661_v55 = vor.u32 %v660_v54, %v656_v53 }
  0x83   : > { %1266 = vrot.lane.b32.xlu1 %v1155_v4, %s3323_s28  ;;  %v1667_v46 = vsel %vm546_vm1, %v1662_v10, %v1666_v17  ;;  %v3759_v4 = vld [vmem:[%s3371_s19 + $0x70] sm:$0xf]  ;;  %v666_v21 = vsel %vm546_vm1, %v661_v55, %v665_v3  ;;  %v2813_v17 = vld [vmem:[%s3371_s19 + $0x78] sm:$0xe] }
  0x84   : > { %v3774_v13 = vcombine.low %v2772_v0, %v3759_v4  ;;  %v2973_v54 = vcombine.low %v2813_v17, %v3755_v63  ;;  %v2972_v56 = vcombine.low %v2812_v33, %v3759_v4 }
  0x85   : > { %1264 = vrot.lane.b32.xlu0 %v1143_v7, %s3323_s28  ;;  %v3767_v7 = vcombine.low %v2774_v57, %v3755_v63 }
  0x86   : > { %v1159_v27 = vshll.u32 %v3774_v13, 16  ;;  %v1157_v41 = vshrl.u32 %v3774_v13, 16  ;;  %v1359_v55 = vrot.slane %v2973_v54, 1  ;;  %v2877_v54 = vld [vmem:[%s3371_s19 + $0x84] sm:$0xe] }
  0x87   : > { %1394 = vrot.lane.b32.xlu1 %v1355_v16, %s3320_s21  ;;  %v3731_v28 = vpop.permute.xlu1 %982  ;;  %v3778_v16 = vld [vmem:[%s3371_s19 + $0x80] ss:$0 sps:$4 sm:$0x11]   ;;  %v1171_v1 = vshll.u32 %v3767_v7, 16  ;;  %v1169_v35 = vshrl.u32 %v3767_v7, 16 }
  0x88   : > { %v3733_v30 = vpop.permute.xlu0 %980  ;;  %v1176_v36 = vshll.u32 %v3778_v16, 16  ;;  %v1161_v47 = vrot.slane %v1159_v27, 1  ;;  %v1360_v3 = vrot.slane %v3778_v16, 1 }
  0x89   : > { %1392 = vrot.lane.b32.xlu0 %v1352_v25, %s3320_s21  ;;  %v1173_v38 = vrot.slane %v1171_v1, 1 }
  0x8a   : > { %v1162_v4 = vor.u32 %v1161_v47, %v1157_v41  ;;  %v1361_v27 = vsel %vm819_vm0, %v1359_v55, %v1360_v3 }
  0x8b   : > { %1506 = vrot.lane.b32.xlu1 %v2987_v45, %s3324_s29  ;;  %v274_v45 = vld [vmem:[%s3371_s19 + $0x60] sm:$0xe] }
  0x8c   : > { %v3745_v52 = vpop.permute.xlu0 %1380  ;;  %v2924_v12 = vcombine.low %v274_v45, %v3700_v62  ;;  %v1867_v62 = vsel %vm819_vm0, %v1865_v8, %v1866_v9  ;;  %v3817_v45 = vcombine.low %v2838_v42, %v3801_v43  ;;  %v1356_v8 = vrot.slane %v2972_v56, 1 }
  0x8d   : > { %1504 = vrot.lane.b32.xlu0 %v2986_v48, %s3324_s29  ;;  %v3750_v59 = vpop.permute.xlu1 %868  ;;  %v1864_v48 = vsel %vm819_vm0, %v1862_v34, %v1863_v49  ;;  %v1164_v34 = vshll.u32 %v3789_v31, 16  ;;  %v2836_v49 = vld [vmem:[%s3371_s19 + $0x78] sm:$0xf]  ;;  %v1357_v9 = vrot.slane %v3789_v31, 1 }
  0x8e   : > { %v844_v22 = vrot.slane %v2924_v12, 1  ;;  %v3823_v57 = vcombine.low %v2836_v49, %v3809_v51  ;;  %v1683_v12 = vshll.u32 %v3817_v45, 16 }
  0x8f   : > { %1778 = vrot.lane.b32.xlu1 %v1667_v46, %s3325_s30  ;;  %v1358_v31 = vsel %vm819_vm0, %v1356_v8, %v1357_v9 }
  0x90   : > { %v846_v46 = vsel %vm819_vm0, %v844_v22, %v845_v26  ;;  %v240_v22 = vld [vmem:[%s3371_s19 + $0x84] sm:$0xf]  ;;  %v1685_v17 = vrot.slane %v1683_v12, 1  ;;  %v3021_v12 = vcombine.low %v2877_v54, %v3801_v43  ;;  %v3251_v54 = vld [vmem:[%s3371_s19 + $0x98] ss:$0 sps:$4 sm:$0x11]  }
  0x91   : > { %1776 = vrot.lane.b32.xlu0 %v1655_v60, %s3325_s30  ;;  %v3769_v2 = vpop.permute.xlu1 %870  ;;  %v1178_v60 = vrot.slane %v1176_v36, 1  ;;  %v1669_v36 = vshrl.u32 %v3823_v57, 16 }
  0x93   : > { %v740_v11 = vpop.permute.xlu0 %739  ;;  %755 = vrot.lane.b32.xlu1 %v654_v40, %s3322_s25  ;;  %v3831_v40 = vld [vmem:[%s3371_s19 + $0x7c] sm:$0xf] }
  0x94   : > { %v1926_v39 = vsel %vm1924_vm3, %v3399_v23, %v740_v11  ;;  %v1174_v23 = vor.u32 %v1173_v38, %v1169_v35  ;;  %v3841_v11 = vld [vmem:[%s3371_s19 + $0x8c] ss:$0 sps:$4 sm:$0x11]   ;;  %v3869_v35 = vld [vmem:[%s3371_s19 + $0x80] ss:$0 sps:$4 sm:$0x11]  }
  0x95   : > { %1904 = vrot.lane.b32.xlu0 %v1864_v48, %s3326_s4  ;;  %v3783_v25 = vpop.permute.xlu1 %1382  ;;  %v1959_v63 = vsel %vm1957_vm4, %v1926_v39, %v3750_v59  ;;  %v1166_v48 = vrot.slane %v1164_v34, 1  ;;  %v1688_v33 = vshll.u32 %v3841_v11, 16  ;;  %v2876_v39 = vld [vmem:[%s3371_s19 + $0x78] sm:$0xe] }
  0x96   : > { %v1992_v14 = vsel %vm1990_vm5, %v1959_v63, %v3733_v30  ;;  %v1179_v16 = vsel %vm546_vm1, %v1174_v23, %v1178_v60  ;;  %v3859_v30 = vld [vmem:[%s3371_s19 + $0x88] sm:$0xf]  ;;  %v3020_v55 = vcombine.low %v2876_v39, %v3809_v51 }
  0x97   : > { %v742_v10 = vpop.permute.xlu0 %741  ;;  %757 = vrot.lane.b32.xlu1 %v666_v21, %s3322_s25  ;;  %v3850_v21 = vld [vmem:[%s3371_s19 + $0x80] ss:$0 sps:$4 sm:$0x11]   ;;  %v3877_v38 = vcombine.low %v240_v22, %v3859_v30 }
  0x98   : > { %v1928_v58 = vsel %vm1924_vm3, %v3404_v29, %v742_v10  ;;  %v1681_v10 = vshrl.u32 %v3817_v45, 16  ;;  %v1869_v22 = vrot.slane %v3850_v21, 1 }
  0x99   : > { %1906 = vrot.lane.b32.xlu0 %v1867_v62, %s3326_s4  ;;  %v3803_v44 = vpop.permute.xlu1 %1254  ;;  %v1961_v59 = vsel %vm1957_vm4, %v1928_v58, %v3769_v2  ;;  %v1671_v2 = vshll.u32 %v3823_v57, 16  ;;  %v1167_v62 = vsel %vm546_vm1, %v1162_v4, %v1166_v48  ;;  %v1690_v58 = vrot.slane %v1688_v33, 1  ;;  %v3897_v4 = vld [vmem:[%s3371_s19 + $0x8c] ss:$0 sps:$4 sm:$0x11]  }
  0x9a   : > { %v1686_v56 = vor.u32 %v1685_v17, %v1681_v10  ;;  %v682_v48 = vshll.u32 %v3877_v38, 16  ;;  %v687_v43 = vshll.u32 %v3897_v4, 16  ;;  %v3930_v10 = vld [vmem:[%s3371_s19 + $0x88] sm:$0xf]  ;;  %v1871_v17 = vrot.slane %v3021_v12, 1 }
  0x9b   : > { %v1253_v53 = vpop.permute.xlu0 %1252  ;;  %886 = vrot.lane.b32.xlu1 %v849_v15, %s3321_s22  ;;  %v1673_v47 = vrot.slane %v1671_v2, 1 }
  0x9c   : > { %v2025_v19 = vsel %vm2023_vm6, %v1992_v14, %v1253_v53  ;;  %v684_v2 = vrot.slane %v682_v48, 1  ;;  %v2815_v48 = vld [vmem:[%s3371_s19 + $0x90] sm:$0xe] }
  0x9d   : > { %884 = vrot.lane.b32.xlu0 %v846_v46, %s3321_s22  ;;  %v3827_v0 = vpop.permute.xlu1 %1494 }
  0x9f   : > { %v1493_v29 = vpop.permute.xlu0 %1492  ;;  %998 = vrot.lane.b32.xlu1 %v3767_v7, %s3319_s20  ;;  %v3853_v7 = vcombine.low %v238_v5, %v3831_v40 }
  0xa1   : > { %996 = vrot.lane.b32.xlu0 %v3774_v13, %s3319_s20  ;;  %v1767_v1 = vpop.permute.xlu1 %1766  ;;  %v1994_v13 = vsel %vm1990_vm5, %v1961_v59, %v3731_v28  ;;  %v2058_v28 = vsel %vm2056_vm7, %v2025_v19, %v3745_v52  ;;  %v670_v15 = vshll.u32 %v3853_v7, 16  ;;  %v1676_v52 = vshll.u32 %v3850_v21, 16  ;;  %v277_v19 = vld [vmem:[%s3371_s19 + $0x84] sm:$0xe] }
  0xa2   : > { %v2027_v41 = vsel %vm2023_vm6, %v1994_v13, %v3803_v44  ;;  %v2091_v42 = vsel %vm2089_vm8, %v2058_v28, %v1493_v29  ;;  %v675_v44 = vshll.u32 %v3869_v35, 16  ;;  %v668_v60 = vshrl.u32 %v3853_v7, 16  ;;  %v2778_v13 = vld [vmem:[%s3371_s19 + $0x90] sm:$0xf] }
  0xa3   : > { %v1765_v26 = vpop.permute.xlu0 %1764  ;;  %1270 = vrot.lane.b32.xlu1 %v1179_v16, %s3323_s28  ;;  %v2060_v23 = vsel %vm2056_vm7, %v2027_v41, %v3783_v25  ;;  %v672_v63 = vrot.slane %v670_v15, 1  ;;  %v1674_v25 = vor.u32 %v1673_v47, %v1669_v36  ;;  %v1678_v3 = vrot.slane %v1676_v52, 1 }
  0xa4   : > { %v2124_v34 = vsel %vm2122_vm9, %v2091_v42, %v1765_v26  ;;  %v2093_v5 = vsel %vm2089_vm8, %v2060_v23, %v3827_v0  ;;  %v1691_v0 = vsel %vm546_vm1, %v1686_v56, %v1690_v58  ;;  %v677_v14 = vrot.slane %v675_v44, 1  ;;  %v3923_v26 = vld [vmem:[%s3371_s19 + $0x94] sm:$0xf] }
  0xa5   : > { %1268 = vrot.lane.b32.xlu0 %v1167_v62, %s3323_s28  ;;  %v3882_v46 = vpop.permute.xlu1 %743  ;;  %v2126_v59 = vsel %vm2122_vm9, %v2093_v5, %v1767_v1  ;;  %v673_v51 = vor.u32 %v672_v63, %v668_v60  ;;  %v680_v16 = vshrl.u32 %v3877_v38, 16  ;;  %v1868_v62 = vrot.slane %v3020_v55, 1  ;;  %v3252_v60 = vld [vmem:[%s3371_s19 + $0x8c] ss:$0 sps:$4 sm:$0x11]  }
  0xa6   : > { %v2927_v33 = vcombine.low %v277_v19, %v3859_v30  ;;  %v689_v36 = vrot.slane %v687_v43, 1  ;;  %v2943_v15 = vcombine.low %v2778_v13, %v3923_v26  ;;  %v1872_v47 = vrot.slane %v3841_v11, 1  ;;  %v2842_v5 = vld [vmem:[%s3371_s19 + $0x9c] sm:$0xf]  ;;  %v3959_v55 = vld [vmem:[%s3371_s19 + $0xa0] sm:$0xf] }
  0xa7   : > { %v1893_v49 = vpop.permute.xlu0 %1892  ;;  %1398 = vrot.lane.b32.xlu1 %v1361_v27, %s3320_s21  ;;  %v276_v27 = vld [vmem:[%s3371_s19 + $0x78] sm:$0xe]  ;;  %v678_v28 = vsel %vm546_vm1, %v673_v51, %v677_v14  ;;  %v685_v21 = vor.u32 %v684_v2, %v680_v16  ;;  %v1870_v42 = vsel %vm819_vm0, %v1868_v62, %v1869_v22  ;;  %v851_v44 = vrot.slane %v3869_v35, 1  ;;  %v2840_v43 = vld [vmem:[%s3371_s19 + $0x90] sm:$0xf] }
  0xa8   : > { %v2157_v53 = vsel %vm2155_vm10, %v2124_v34, %v1893_v49  ;;  %v2926_v52 = vcombine.low %v276_v27, %v3831_v40  ;;  %v853_v39 = vrot.slane %v2927_v33, 1  ;;  %v1195_v11 = vshll.u32 %v2943_v15, 16  ;;  %v3973_v19 = vld [vmem:[%s3371_s19 + $0x94] sm:$0xf] }
  0xa9   : > { %1396 = vrot.lane.b32.xlu0 %v1358_v31, %s3320_s21  ;;  %3075 = vmatprep.mubr.msk.bf16.mxu0 %vm2208_vm11, %v2157_v53  ;;  %v3902_v29 = vpop.permute.xlu1 %745  ;;  %v2776_v31 = vld [vmem:[%s3371_s19 + $0x84] sm:$0xf]  ;;  %v690_v49 = vsel %vm546_vm1, %v685_v21, %v689_v36  ;;  %v854_v53 = vrot.slane %v3897_v4, 1  ;;  %v1873_v56 = vsel %vm819_vm0, %v1871_v17, %v1872_v47  ;;  %v1188_v14 = vshll.u32 %v3252_v60, 16  ;;  %v242_v17 = vld [vmem:[%s3371_s19 + $0x90] sm:$0xf] }
  0xaa   : > { %v2942_v30 = vcombine.low %v2776_v31, %v3930_v10  ;;  %v850_v58 = vrot.slane %v2926_v52, 1  ;;  %v2975_v16 = vcombine.low %v2815_v48, %v3923_v26  ;;  %v3969_v2 = vcombine.low %v2842_v5, %v3959_v55  ;;  %v3985_v33 = vld [vmem:[%s3371_s19 + $0x94] sm:$0xf]  ;;  %v3990_v52 = vld [vmem:[%s3371_s19 + $0xa4] ss:$0 sps:$4 sm:$0x11]  }
  0xab   : > { %v1895_v8 = vpop.permute.xlu0 %1894  ;;  %1510 = vrot.lane.b32.xlu1 %v3817_v45, %s3324_s29  ;;  %v1679_v45 = vsel %vm546_vm1, %v1674_v25, %v1678_v3  ;;  %v855_v4 = vsel %vm819_vm0, %v853_v39, %v854_v53  ;;  %v2814_v25 = vld [vmem:[%s3371_s19 + $0x84] sm:$0xe]  ;;  %v1193_v3 = vshrl.u32 %v2943_v15, 16  ;;  %v1190_v26 = vrot.slane %v1188_v14, 1 }
  0xac   : > { %v2159_v9 = vsel %vm2155_vm10, %v2126_v59, %v1895_v8  ;;  %v1183_v23 = vshll.u32 %v2942_v30, 16  ;;  %v1197_v59 = vrot.slane %v1195_v11, 1  ;;  %v1200_v8 = vshll.u32 %v3251_v54, 16  ;;  %v3998_v53 = vld [vmem:[%s3371_s19 + $0x98] ss:$0 sps:$4 sm:$0x11]  }
  0xad   : > { %1508 = vrot.lane.b32.xlu0 %v3823_v57, %s3324_s29  ;;  %3076 = vmatmul.mubr.msk.bf16.vlgmr.msra.gmra.mrb[0].mxu0 %vm2208_vm11, %v2159_v9  ;;  %v3917_v1 = vpop.permute.xlu1 %874  ;;  %v852_v9 = vsel %vm819_vm0, %v850_v58, %v851_v44  ;;  %v1181_v12 = vshrl.u32 %v2942_v30, 16  ;;  %v3981_v31 = vcombine.low %v2840_v43, %v3973_v19  ;;  %v1365_v21 = vrot.slane %v2975_v16, 1  ;;  %v244_v44 = vld [vmem:[%s3371_s19 + $0x9c] sm:$0xf]  ;;  %v2878_v43 = vld [vmem:[%s3371_s19 + $0x90] sm:$0xe] }
  0xae   : > { %v1198_v62 = vor.u32 %v1197_v59, %v1193_v3  ;;  %v1202_v22 = vrot.slane %v1200_v8, 1  ;;  %v1707_v36 = vshll.u32 %v3969_v2, 16  ;;  %v1363_v47 = vrot.slane %v3252_v60, 1  ;;  %v4021_v3 = vld [vmem:[%s3371_s19 + $0x98] ss:$0 sps:$4 sm:$0x11]  }
  0xaf   : > { %v3925_v57 = vpop.permute.xlu0 %872  ;;  %1782 = vrot.lane.b32.xlu1 %v1691_v0, %s3325_s30  ;;  %v1185_v0 = vrot.slane %v1183_v23, 1  ;;  %v4001_v11 = vcombine.low %v242_v17, %v3985_v33  ;;  %v1695_v58 = vshll.u32 %v3981_v31, 16  ;;  %v1705_v60 = vshrl.u32 %v3969_v2, 16 }
  0xb0   : > { %v1203_v39 = vsel %vm546_vm1, %v1198_v62, %v1202_v22  ;;  %v1709_v48 = vrot.slane %v1707_v36, 1  ;;  %v1700_v16 = vshll.u32 %v3998_v53, 16  ;;  %v3022_v36 = vcombine.low %v2878_v43, %v3973_v19 }
  0xb1   : > { %1780 = vrot.lane.b32.xlu0 %v1679_v45, %s3325_s30  ;;  %v3937_v41 = vpop.permute.xlu1 %986  ;;  %v2974_v45 = vcombine.low %v2814_v25, %v3930_v10  ;;  %v1186_v27 = vor.u32 %v1185_v0, %v1181_v12  ;;  %v1366_v10 = vrot.slane %v3251_v54, 1  ;;  %v1693_v25 = vshrl.u32 %v3981_v31, 16 }
  0xb2   : > { %v1697_v14 = vrot.slane %v1695_v58, 1  ;;  %v279_v58 = vld [vmem:[%s3371_s19 + $0x9c] sm:$0xe]  ;;  %v857_v43 = vrot.slane %v4021_v3, 1 }
  0xb3   : > { %v3943_v34 = vpop.permute.xlu0 %984  ;;  %759 = vrot.lane.b32.xlu1 %v678_v28, %s3322_s25  ;;  %v1367_v23 = vsel %vm819_vm0, %v1365_v21, %v1366_v10 }
  0xb5   : > { %1908 = vrot.lane.b32.xlu0 %v1870_v42, %s3326_s4  ;;  %v3950_v40 = vpop.permute.xlu1 %1258  ;;  %v1362_v42 = vrot.slane %v2974_v45, 1  ;;  %v1710_v45 = vor.u32 %v1709_v48, %v1705_v60  ;;  %v1874_v48 = vrot.slane %v3022_v36, 1 }
  0xb7   : > { %v1257_v63 = vpop.permute.xlu0 %1256  ;;  %761 = vrot.lane.b32.xlu1 %v690_v49, %s3322_s25  ;;  %v1930_v49 = vsel %vm1924_vm3, %v3455_v18, %v3882_v46  ;;  %v4009_v18 = vld [vmem:[%s3371_s19 + $0xa0] sm:$0xf]  ;;  %v1364_v5 = vsel %vm819_vm0, %v1362_v42, %v1363_v47  ;;  %v1702_v42 = vrot.slane %v1700_v16, 1 }
  0xb8   : > { %v4030_v8 = vcombine.low %v244_v44, %v4009_v18 }
  0xb9   : > { %1910 = vrot.lane.b32.xlu0 %v1873_v56, %s3326_s4  ;;  %v3964_v35 = vpop.permute.xlu1 %1386  ;;  %v1191_v56 = vsel %vm546_vm1, %v1186_v27, %v1190_v26  ;;  %v699_v27 = vshll.u32 %v4021_v3, 16 }
  0xbb   : > { %v1385_v51 = vpop.permute.xlu0 %1384  ;;  %890 = vrot.lane.b32.xlu1 %v855_v4, %s3321_s22  ;;  %v1712_v4 = vshll.u32 %v3990_v52, 16 }
  0xbd   : > { %888 = vrot.lane.b32.xlu0 %v852_v9, %s3321_s22  ;;  %v3978_v13 = vpop.permute.xlu1 %1498  ;;  %v1714_v22 = vrot.slane %v1712_v4, 1 }
  0xbf   : > { %v1497_v28 = vpop.permute.xlu0 %1496  ;;  %1002 = vrot.lane.b32.xlu1 %v2943_v15, %s3319_s20  ;;  %v1963_v15 = vsel %vm1957_vm4, %v1930_v49, %v3925_v57 }
  0xc0   : > { %v1996_v46 = vsel %vm1990_vm5, %v1963_v15, %v3943_v34  ;;  %v1932_v34 = vsel %vm1924_vm3, %v3468_v32, %v3902_v29 }
  0xc1   : > { %1000 = vrot.lane.b32.xlu0 %v2942_v30, %s3319_s20  ;;  %v1771_v54 = vpop.permute.xlu1 %1770  ;;  %v2029_v57 = vsel %vm2023_vm6, %v1996_v46, %v1257_v63  ;;  %v694_v63 = vshll.u32 %v4001_v11, 16  ;;  %v1965_v9 = vsel %vm1957_vm4, %v1932_v34, %v3917_v1  ;;  %v4085_v34 = vld [vmem:[%s3371_s19 + $0xa0] sm:$0xf] }
  0xc2   : > { %v2062_v59 = vsel %vm2056_vm7, %v2029_v57, %v1385_v51  ;;  %v1998_v32 = vsel %vm1990_vm5, %v1965_v9, %v3937_v41  ;;  %v692_v41 = vshrl.u32 %v4001_v11, 16  ;;  %v1875_v57 = vrot.slane %v3998_v53, 1 }
  0xc3   : > { %v1769_v30 = vpop.permute.xlu0 %1768  ;;  %1274 = vrot.lane.b32.xlu1 %v1203_v39, %s3323_s28  ;;  %v2095_v12 = vsel %vm2089_vm8, %v2062_v59, %v1497_v28  ;;  %v2031_v62 = vsel %vm2023_vm6, %v1998_v32, %v3950_v40  ;;  %v696_v17 = vrot.slane %v694_v63, 1  ;;  %v4053_v40 = vld [vmem:[%s3371_s19 + $0xa4] ss:$0 sps:$4 sm:$0x11]   ;;  %v706_v28 = vshll.u32 %v4030_v8, 16 }
  0xc4   : > { %v2128_v29 = vsel %vm2122_vm9, %v2095_v12, %v1769_v30  ;;  %v2064_v26 = vsel %vm2056_vm7, %v2031_v62, %v3964_v35  ;;  %v1698_v35 = vor.u32 %v1697_v14, %v1693_v25  ;;  %v2879_v39 = vld [vmem:[%s3371_s19 + $0x9c] sm:$0xe]  ;;  %v711_v46 = vshll.u32 %v4053_v40, 16 }
  0xc5   : > { %1272 = vrot.lane.b32.xlu0 %v1191_v56, %s3323_s28  ;;  %v4035_v0 = vpop.permute.xlu1 %747  ;;  %v2097_v21 = vsel %vm2089_vm8, %v2064_v26, %v3978_v13  ;;  %v1715_v56 = vsel %vm546_vm1, %v1710_v45, %v1714_v22  ;;  %v701_v13 = vrot.slane %v699_v27, 1  ;;  %v697_v19 = vor.u32 %v696_v17, %v692_v41  ;;  %v2780_v25 = vld [vmem:[%s3371_s19 + $0x9c] sm:$0xf]  ;;  %v3267_v22 = vld [vmem:[%s3371_s19 + $0xb0] ss:$0 sps:$4 sm:$0x11]  }
  0xc6   : > { %v2130_v47 = vsel %vm2122_vm9, %v2097_v21, %v1771_v54  ;;  %v704_v54 = vshrl.u32 %v4030_v8, 16  ;;  %v708_v44 = vrot.slane %v706_v28, 1  ;;  %v3023_v30 = vcombine.low %v2879_v39, %v3959_v55  ;;  %v3268_v41 = vld [vmem:[%s3371_s19 + $0xa4] ss:$0 sps:$4 sm:$0x11]  }
  0xc7   : > { %v1897_v51 = vpop.permute.xlu0 %1896  ;;  %1402 = vrot.lane.b32.xlu1 %v1367_v23, %s3320_s21  ;;  %v1703_v60 = vsel %vm546_vm1, %v1698_v35, %v1702_v42  ;;  %v2929_v59 = vcombine.low %v279_v58, %v4009_v18  ;;  %v702_v63 = vsel %vm546_vm1, %v697_v19, %v701_v13  ;;  %v713_v53 = vrot.slane %v711_v46, 1  ;;  %v2816_v21 = vld [vmem:[%s3371_s19 + $0x9c] sm:$0xe]  ;;  %v4116_v39 = vld [vmem:[%s3371_s19 + $0xb8] sm:$0xf] }
  0xc8   : > { %v2161_v1 = vsel %vm2155_vm10, %v2128_v29, %v1897_v51  ;;  %v709_v9 = vor.u32 %v708_v44, %v704_v54  ;;  %v1876_v16 = vsel %vm819_vm0, %v1874_v48, %v1875_v57  ;;  %v1877_v32 = vrot.slane %v3023_v30, 1  ;;  %v2844_v46 = vld [vmem:[%s3371_s19 + $0xa8] sm:$0xf] }
  0xc9   : > { %1400 = vrot.lane.b32.xlu0 %v1364_v5, %s3320_s21  ;;  %3079 = vmatprep.mubr.msk.bf16.mxu0 %vm2208_vm11, %v2161_v1  ;;  %v4058_v10 = vpop.permute.xlu1 %749  ;;  %v2783_v5 = vld [vmem:[%s3371_s19 + $0xac] sm:$0xf]  ;;  %v1878_v29 = vrot.slane %v3990_v52, 1  ;;  %v2944_v18 = vcombine.low %v2780_v25, %v4085_v34  ;;  %v860_v51 = vrot.slane %v4053_v40, 1  ;;  %v859_v62 = vrot.slane %v2929_v59, 1 }
  0xca   : > { %v714_v45 = vsel %vm546_vm1, %v709_v9, %v713_v53  ;;  %v2817_v40 = vld [vmem:[%s3371_s19 + $0xa8] sm:$0xe]  ;;  %v1224_v42 = vshll.u32 %v3267_v22, 16  ;;  %v1212_v19 = vshll.u32 %v3268_v41, 16  ;;  %v2976_v44 = vcombine.low %v2816_v21, %v4085_v34 }
  0xcb   : > { %v1899_v49 = vpop.permute.xlu0 %1898  ;;  %1514 = vrot.lane.b32.xlu1 %v3969_v2, %s3324_s29  ;;  %v278_v2 = vld [vmem:[%s3371_s19 + $0x90] sm:$0xe]  ;;  %v1879_v26 = vsel %vm819_vm0, %v1877_v32, %v1878_v29  ;;  %v1207_v17 = vshll.u32 %v2944_v18, 16  ;;  %v861_v36 = vsel %vm819_vm0, %v859_v62, %v860_v51  ;;  %v1205_v13 = vshrl.u32 %v2944_v18, 16  ;;  %v246_v59 = vld [vmem:[%s3371_s19 + $0xa8] sm:$0xf] }
  0xcc   : > { %v2163_v15 = vsel %vm2155_vm10, %v2130_v47, %v1899_v49  ;;  %v2928_v55 = vcombine.low %v278_v2, %v3985_v33  ;;  %v2977_v47 = vcombine.low %v2817_v40, %v2783_v5  ;;  %v2846_v49 = vld [vmem:[%s3371_s19 + $0xb4] sm:$0xf]  ;;  %v4124_v2 = vld [vmem:[%s3371_s19 + $0xac] sm:$0xf]  ;;  %v1226_v48 = vrot.slane %v1224_v42, 1 }
  0xcd   : > { %1512 = vrot.lane.b32.xlu0 %v3981_v31, %s3324_s29  ;;  %3080 = vmatmul.mubr.msk.bf16.gmra.mrb[4].mxu0 %vm2208_vm11, %v2163_v15  ;;  %v4075_v23 = vpop.permute.xlu1 %878  ;;  %v2782_v31 = vld [vmem:[%s3371_s19 + $0xa8] sm:$0xf]  ;;  %v1209_v58 = vrot.slane %v1207_v17, 1  ;;  %v4128_v30 = vcombine.low %v2846_v49, %v4116_v39  ;;  %v4134_v34 = vcombine.low %v2844_v46, %v4124_v2  ;;  %v1372_v9 = vrot.slane %v3267_v22, 1 }
  0xce   : > { %v2945_v12 = vcombine.low %v2782_v31, %v2783_v5  ;;  %v856_v1 = vrot.slane %v2928_v55, 1  ;;  %v1214_v5 = vrot.slane %v1212_v19, 1  ;;  %v1371_v25 = vrot.slane %v2977_v47, 1  ;;  %v4138_v55 = vld [vmem:[%s3371_s19 + $0xac] sm:$0xf] }
  0xcf   : > { %v4081_v4 = vpop.permute.xlu0 %876  ;;  %1786 = vrot.lane.b32.xlu1 %v1715_v56, %s3325_s30  ;;  %v1210_v31 = vor.u32 %v1209_v58, %v1205_v13  ;;  %v1368_v53 = vrot.slane %v2976_v44, 1  ;;  %v4141_v32 = vld [vmem:[%s3371_s19 + $0xbc] ss:$0 sps:$4 sm:$0x11]   ;;  %v1731_v29 = vshll.u32 %v4128_v30, 16  ;;  %v1934_v51 = vsel %vm1924_vm3, %v3532_v50, %v4035_v0 }
  0xd0   : > { %v1219_v52 = vshll.u32 %v2945_v12, 16  ;;  %v1217_v3 = vshrl.u32 %v2945_v12, 16  ;;  %v858_v56 = vsel %vm819_vm0, %v856_v1, %v857_v43  ;;  %v4154_v62 = vcombine.low %v246_v59, %v4138_v55  ;;  %v4162_v50 = vld [vmem:[%s3371_s19 + $0xb8] sm:$0xf]  ;;  %v2880_v46 = vld [vmem:[%s3371_s19 + $0xa8] sm:$0xe] }
  0xd1   : > { %1784 = vrot.lane.b32.xlu0 %v1703_v60, %s3325_s30  ;;  %v4092_v14 = vpop.permute.xlu1 %990  ;;  %v1967_v1 = vsel %vm1957_vm4, %v1934_v51, %v4081_v4  ;;  %v1215_v22 = vsel %vm546_vm1, %v1210_v31, %v1214_v5  ;;  %v1736_v40 = vshll.u32 %v4141_v32, 16  ;;  %v1733_v21 = vrot.slane %v1731_v29, 1  ;;  %v4206_v59 = vld [vmem:[%s3371_s19 + $0xbc] ss:$0 sps:$4 sm:$0x11]  }
  0xd2   : > { %v1221_v35 = vrot.slane %v1219_v52, 1  ;;  %v1719_v52 = vshll.u32 %v4134_v34, 16 }
  0xd3   : > { %v4097_v33 = vpop.permute.xlu0 %988  ;;  %763 = vrot.lane.b32.xlu1 %v702_v63, %s3322_s25  ;;  %v1738_v44 = vrot.slane %v1736_v40, 1  ;;  %v2786_v40 = vld [vmem:[%s3371_s19 + $0xc0] sm:$0xf] }
  0xd4   : > { %v1222_v60 = vor.u32 %v1221_v35, %v1217_v3  ;;  %v2000_v0 = vsel %vm1990_vm5, %v1967_v1, %v4097_v33  ;;  %v1729_v3 = vshrl.u32 %v4128_v30, 16  ;;  %v4174_v35 = vld [vmem:[%s3371_s19 + $0xb0] ss:$0 sps:$4 sm:$0x11]   ;;  %v1936_v33 = vsel %vm1924_vm3, %v3546_v61, %v4058_v10 }
  0xd5   : > { %1912 = vrot.lane.b32.xlu0 %v1876_v16, %s3326_s4  ;;  %v4105_v27 = vpop.permute.xlu1 %1262  ;;  %v1369_v16 = vrot.slane %v3268_v41, 1  ;;  %v1373_v41 = vsel %vm819_vm0, %v1371_v25, %v1372_v9  ;;  %v1969_v49 = vsel %vm1957_vm4, %v1936_v33, %v4075_v23  ;;  %v1721_v58 = vrot.slane %v1719_v52, 1  ;;  %v4240_v33 = vld [vmem:[%s3371_s19 + $0xb8] sm:$0xf] }
  0xd6   : > { %v1227_v43 = vsel %vm546_vm1, %v1222_v60, %v1226_v48  ;;  %v2002_v61 = vsel %vm1990_vm5, %v1969_v49, %v4092_v14  ;;  %v1734_v48 = vor.u32 %v1733_v21, %v1729_v3  ;;  %v723_v31 = vshll.u32 %v4174_v35, 16  ;;  %v280_v21 = vld [vmem:[%s3371_s19 + $0xa8] sm:$0xe] }
  0xd7   : > { %v1261_v28 = vpop.permute.xlu0 %1260  ;;  %765 = vrot.lane.b32.xlu1 %v714_v45, %s3322_s25  ;;  %v4151_v45 = vld [vmem:[%s3371_s19 + $0xb0] ss:$0 sps:$4 sm:$0x11]   ;;  %v1370_v17 = vsel %vm819_vm0, %v1368_v53, %v1369_v16  ;;  %v2035_v60 = vsel %vm2023_vm6, %v2002_v61, %v4105_v27  ;;  %v716_v14 = vshrl.u32 %v4154_v62, 16 }
  0xd8   : > { %v2033_v4 = vsel %vm2023_vm6, %v2000_v0, %v1261_v28  ;;  %v718_v28 = vshll.u32 %v4154_v62, 16  ;;  %v1724_v19 = vshll.u32 %v4151_v45, 16  ;;  %v281_v0 = vld [vmem:[%s3371_s19 + $0xb4] sm:$0xe] }
  0xd9   : > { %1914 = vrot.lane.b32.xlu0 %v1879_v26, %s3326_s4  ;;  %v4118_v15 = vpop.permute.xlu1 %1390  ;;  %v248_v26 = vld [vmem:[%s3371_s19 + $0xb4] sm:$0xf] }
  0xda   : > { %v4183_v47 = vcombine.low %v248_v26, %v4162_v50  ;;  %v2068_v5 = vsel %vm2056_vm7, %v2035_v60, %v4118_v15  ;;  %v720_v25 = vrot.slane %v718_v28, 1  ;;  %v1726_v16 = vrot.slane %v1724_v19, 1  ;;  %v3285_v60 = vld [vmem:[%s3371_s19 + $0xc8] ss:$0 sps:$4 sm:$0x11]  }
  0xdb   : > { %v1389_v54 = vpop.permute.xlu0 %1388  ;;  %894 = vrot.lane.b32.xlu1 %v861_v36, %s3321_s22  ;;  %v1717_v36 = vshrl.u32 %v4134_v34, 16  ;;  %v3024_v15 = vcombine.low %v2880_v46, %v4124_v2  ;;  %v735_v26 = vshll.u32 %v4206_v59, 16  ;;  %v2931_v28 = vcombine.low %v281_v0, %v4162_v50 }
  0xdc   : > { %v2066_v42 = vsel %vm2056_vm7, %v2033_v4, %v1389_v54  ;;  %v730_v27 = vshll.u32 %v4183_v47, 16  ;;  %v721_v2 = vor.u32 %v720_v25, %v716_v14  ;;  %v4233_v4 = vld [vmem:[%s3371_s19 + $0xc4] sm:$0xf]  ;;  %v866_v46 = vrot.slane %v4206_v59, 1  ;;  %v2818_v59 = vld [vmem:[%s3371_s19 + $0xb4] sm:$0xe] }
  0xdd   : > { %892 = vrot.lane.b32.xlu0 %v858_v56, %s3321_s22  ;;  %v4131_v57 = vpop.permute.xlu1 %1502  ;;  %v1722_v53 = vor.u32 %v1721_v58, %v1717_v36  ;;  %v2784_v36 = vld [vmem:[%s3371_s19 + $0xb4] sm:$0xf]  ;;  %v737_v49 = vrot.slane %v735_v26, 1  ;;  %v3286_v14 = vld [vmem:[%s3371_s19 + $0xbc] ss:$0 sps:$4 sm:$0x11]  }
  0xde   : > { %v732_v52 = vrot.slane %v730_v27, 1  ;;  %v4277_v26 = vld [vmem:[%s3371_s19 + $0xc4] sm:$0xf] }
  0xdf   : > { %v1501_v63 = vpop.permute.xlu0 %1500  ;;  %1006 = vrot.lane.b32.xlu1 %v2945_v12, %s3319_s20 }
  0xe0   : > { %v2099_v56 = vsel %vm2089_vm8, %v2066_v42, %v1501_v63  ;;  %v2101_v63 = vsel %vm2089_vm8, %v2068_v5, %v4131_v57  ;;  %v1739_v57 = vsel %vm546_vm1, %v1734_v48, %v1738_v44  ;;  %v1884_v42 = vrot.slane %v4141_v32, 1 }
  0xe1   : > { %1004 = vrot.lane.b32.xlu0 %v2944_v18, %s3319_s20  ;;  %v1775_v12 = vpop.permute.xlu1 %1774  ;;  %v2946_v32 = vcombine.low %v2784_v36, %v4240_v33  ;;  %v865_v44 = vrot.slane %v2931_v28, 1  ;;  %v863_v5 = vrot.slane %v4174_v35, 1 }
  0xe2   : > { %v2134_v29 = vsel %vm2122_vm9, %v2101_v63, %v1775_v12  ;;  %v728_v12 = vshrl.u32 %v4183_v47, 16  ;;  %v2819_v63 = vld [vmem:[%s3371_s19 + $0xc0] sm:$0xe] }
  0xe3   : > { %v1773_v18 = vpop.permute.xlu0 %1772  ;;  %1278 = vrot.lane.b32.xlu1 %v1227_v43, %s3323_s28  ;;  %v2881_v43 = vld [vmem:[%s3371_s19 + $0xb4] sm:$0xe]  ;;  %v1231_v25 = vshll.u32 %v2946_v32, 16  ;;  %v2979_v0 = vcombine.low %v2819_v63, %v4233_v4 }
  0xe4   : > { %v2132_v10 = vsel %vm2122_vm9, %v2099_v56, %v1773_v18  ;;  %v1727_v18 = vsel %vm546_vm1, %v1722_v53, %v1726_v16  ;;  %v2947_v56 = vcombine.low %v2786_v40, %v4233_v4  ;;  %v867_v53 = vsel %vm819_vm0, %v865_v44, %v866_v46 }
  0xe5   : > { %1276 = vrot.lane.b32.xlu0 %v1215_v22, %s3323_s28  ;;  %v4188_v13 = vpop.permute.xlu1 %751  ;;  %v725_v22 = vrot.slane %v723_v31, 1  ;;  %v1377_v4 = vrot.slane %v2979_v0, 1 }
  0xe6   : > { %v1241_v16 = vshrl.u32 %v2947_v56, 16 }
  0xe7   : > { %v1901_v54 = vpop.permute.xlu0 %1900  ;;  %1406 = vrot.lane.b32.xlu1 %v1373_v41, %s3320_s21  ;;  %v1880_v41 = vrot.slane %v3024_v15, 1 }
  0xe8   : > { %v2165_v23 = vsel %vm2155_vm10, %v2132_v10, %v1901_v54  ;;  %v2930_v10 = vcombine.low %v280_v21, %v4138_v55 }
  0xe9   : > { %1404 = vrot.lane.b32.xlu0 %v1370_v17, %s3320_s21  ;;  %3083 = vmatprep.mubr.msk.bf16.mxu0 %vm2208_vm11, %v2165_v23  ;;  %v4211_v9 = vpop.permute.xlu1 %753  ;;  %v1881_v17 = vrot.slane %v4151_v45, 1  ;;  %v733_v45 = vor.u32 %v732_v52, %v728_v12  ;;  %v1243_v23 = vshll.u32 %v2947_v56, 16  ;;  %v2848_v52 = vld [vmem:[%s3371_s19 + $0xc0] sm:$0xf] }
  0xea   : > { %v862_v31 = vrot.slane %v2930_v10, 1 }
  0xeb   : > { %v1903_v51 = vpop.permute.xlu0 %1902  ;;  %1518 = vrot.lane.b32.xlu1 %v4128_v30, %s3324_s29  ;;  %v1882_v19 = vsel %vm819_vm0, %v1880_v41, %v1881_v17  ;;  %v738_v54 = vsel %vm546_vm1, %v733_v45, %v737_v49  ;;  %v1245_v15 = vrot.slane %v1243_v23, 1  ;;  %v1378_v45 = vrot.slane %v3285_v60, 1 }
  0xec   : > { %v2167_v1 = vsel %vm2155_vm10, %v2134_v29, %v1903_v51  ;;  %v1248_v29 = vshll.u32 %v3285_v60, 16  ;;  %v2850_v51 = vld [vmem:[%s3371_s19 + $0xcc] sm:$0xf]  ;;  %v864_v35 = vsel %vm819_vm0, %v862_v31, %v863_v5  ;;  %v1375_v49 = vrot.slane %v3286_v14, 1 }
  0xed   : > { %1516 = vrot.lane.b32.xlu0 %v4134_v34, %s3324_s29  ;;  %3084 = vmatmul.mubr.msk.bf16.gmra.mrb[8].mxu0 %vm2208_vm11, %v2167_v1  ;;  %v4226_v30 = vpop.permute.xlu1 %882  ;;  %v3025_v34 = vcombine.low %v2881_v43, %v4116_v39  ;;  %v726_v39 = vsel %vm546_vm1, %v721_v2, %v725_v22  ;;  %v1229_v1 = vshrl.u32 %v2946_v32, 16  ;;  %v1236_v22 = vshll.u32 %v3286_v14, 16  ;;  %v4273_v2 = vld [vmem:[%s3371_s19 + $0xd0] sm:$0xf] }
  0xee   : > { %v1246_v41 = vor.u32 %v1245_v15, %v1241_v16  ;;  %v1250_v17 = vrot.slane %v1248_v29, 1  ;;  %v1940_v5 = vsel %vm1924_vm3, %v3629_v37, %v4211_v9  ;;  %v2883_v15 = vld [vmem:[%s3371_s19 + $0xcc] sm:$0xe] }
  0xef   : > { %v4235_v3 = vpop.permute.xlu0 %880  ;;  %1790 = vrot.lane.b32.xlu1 %v1739_v57, %s3325_s30  ;;  %v1883_v61 = vrot.slane %v3025_v34, 1  ;;  %v1233_v57 = vrot.slane %v1231_v25, 1  ;;  %v2995_v34 = vcombine.low %v2850_v51, %v4273_v2  ;;  %v1238_v36 = vrot.slane %v1236_v22, 1  ;;  %v2882_v51 = vld [vmem:[%s3371_s19 + $0xc0] sm:$0xe] }
  0xf0   : > { %v3027_v22 = vcombine.low %v2883_v15, %v4273_v2 }
  0xf1   : > { %1788 = vrot.lane.b32.xlu0 %v1727_v18, %s3325_s30  ;;  %v4248_v58 = vpop.permute.xlu1 %994  ;;  %v1885_v55 = vsel %vm819_vm0, %v1883_v61, %v1884_v42  ;;  %v2978_v18 = vcombine.low %v2818_v59, %v4240_v33  ;;  %v1234_v21 = vor.u32 %v1233_v57, %v1229_v1  ;;  %v2994_v42 = vcombine.low %v2848_v52, %v4277_v26 }
  0xf2   : > { %v1251_v61 = vsel %vm546_vm1, %v1246_v41, %v1250_v17  ;;  %v1755_v10 = vshll.u32 %v2995_v34, 16  ;;  %v1753_v31 = vshrl.u32 %v2995_v34, 16 }
  0xf3   : > { %v993_v50 = vpop.permute.xlu0 %992  ;;  %767 = vrot.lane.b32.xlu1 %v726_v39, %s3322_s25  ;;  %v4286_v39 = vld [vmem:[%s3371_s19 + $0xd4] ss:$0 sps:$4 sm:$0x11]   ;;  %v1374_v33 = vrot.slane %v2978_v18, 1  ;;  %v1239_v46 = vsel %vm546_vm1, %v1234_v21, %v1238_v36  ;;  %v1743_v23 = vshll.u32 %v2994_v42, 16  ;;  %v1741_v25 = vshrl.u32 %v2994_v42, 16 }
  0xf4   : > { %v1757_v14 = vrot.slane %v1755_v10, 1  ;;  %v3026_v18 = vcombine.low %v2882_v51, %v4277_v26  ;;  %v1889_v21 = vrot.slane %v3027_v22, 1 }
  0xf5   : > { %1916 = vrot.lane.b32.xlu0 %v1882_v19, %s3326_s4  ;;  %v4258_v48 = vpop.permute.xlu1 %1266  ;;  %v1938_v19 = vsel %vm1924_vm3, %v3608_v20, %v4188_v13  ;;  %v1379_v13 = vsel %vm819_vm0, %v1377_v4, %v1378_v45 }
  0xf6   : > { %v1758_v57 = vor.u32 %v1757_v14, %v1753_v31  ;;  %v1886_v26 = vrot.slane %v3026_v18, 1 }
  0xf7   : > { %v1265_v27 = vpop.permute.xlu0 %1264  ;;  %769 = vrot.lane.b32.xlu1 %v738_v54, %s3322_s25  ;;  %v1971_v54 = vsel %vm1957_vm4, %v1938_v19, %v4235_v3  ;;  %v1760_v3 = vshll.u32 %v4286_v39, 16 }
  0xf8   : > { %v2004_v60 = vsel %vm1990_vm5, %v1971_v54, %v993_v50 }
  0xf9   : > { %1918 = vrot.lane.b32.xlu0 %v1885_v55, %s3326_s4  ;;  %v4269_v43 = vpop.permute.xlu1 %1394  ;;  %v2037_v20 = vsel %vm2023_vm6, %v2004_v60, %v1265_v27  ;;  %v1973_v27 = vsel %vm1957_vm4, %v1940_v5, %v4226_v30 }
  0xfa   : > { %v2006_v29 = vsel %vm1990_vm5, %v1973_v27, %v4248_v58  ;;  %v1762_v58 = vrot.slane %v1760_v3, 1 }
  0xfb   : > { %v1393_v12 = vpop.permute.xlu0 %1392  ;;  %898 = vrot.lane.b32.xlu1 %v867_v53, %s3321_s22  ;;  %v1745_v53 = vrot.slane %v1743_v23, 1 }
  0xfc   : > { %v2070_v50 = vsel %vm2056_vm7, %v2037_v20, %v1393_v12  ;;  %v1763_v2 = vsel %vm546_vm1, %v1758_v57, %v1762_v58 }
  0xfd   : > { %896 = vrot.lane.b32.xlu0 %v864_v35, %s3321_s22  ;;  %v1507_v40 = vpop.permute.xlu1 %1506  ;;  %v2039_v35 = vsel %vm2023_vm6, %v2006_v29, %v4258_v48  ;;  %v1746_v0 = vor.u32 %v1745_v53, %v1741_v25 }
  0xfe   : > { %v2072_v30 = vsel %vm2056_vm7, %v2039_v35, %v4269_v43 }
  0xff   : > { %v1505_v28 = vpop.permute.xlu0 %1504  ;;  %1010 = vrot.lane.b32.xlu1 %v2947_v56, %s3319_s20  ;;  %v3292_v56 = vld [vmem:[%s3371_s19 + $0xc8] ss:$0 sps:$4 sm:$0x11]   ;;  %v2105_v12 = vsel %vm2089_vm8, %v2072_v30, %v1507_v40  ;;  %v1890_v40 = vrot.slane %v4286_v39, 1 }
 0x100   : > { %v2103_v63 = vsel %vm2089_vm8, %v2070_v50, %v1505_v28  ;;  %v1748_v16 = vshll.u32 %v3292_v56, 16  ;;  %v1887_v4 = vrot.slane %v3292_v56, 1 }
 0x101   : > { %1008 = vrot.lane.b32.xlu0 %v2946_v32, %s3319_s20  ;;  %v1779_v44 = vpop.permute.xlu1 %1778  ;;  %v1376_v32 = vsel %vm819_vm0, %v1374_v33, %v1375_v49 }
 0x102   : > { %v1750_v48 = vrot.slane %v1748_v16, 1  ;;  %v2138_v41 = vsel %vm2122_vm9, %v2105_v12, %v1779_v44  ;;  %v1888_v33 = vsel %vm819_vm0, %v1886_v26, %v1887_v4 }
 0x103   : > { %v1777_v55 = vpop.permute.xlu0 %1776  ;;  %1282 = vrot.lane.b32.xlu1 %v1251_v61, %s3323_s28 }
 0x104   : > { %v2136_v37 = vsel %vm2122_vm9, %v2103_v63, %v1777_v55  ;;  %v1751_v28 = vsel %vm546_vm1, %v1746_v0, %v1750_v48 }
 0x105   : > { %1280 = vrot.lane.b32.xlu0 %v1239_v46, %s3323_s28  ;;  %v756_v59 = vpop.permute.xlu1 %755 }
 0x106   : > { %v1942_v46 = vsel %vm1924_vm3, %v3710_v6, %v756_v59 }
 0x107   : > { %v1905_v9 = vpop.permute.xlu0 %1904  ;;  %1410 = vrot.lane.b32.xlu1 %v1379_v13, %s3320_s21 }
 0x108   : > { %v2169_v1 = vsel %vm2155_vm10, %v2136_v37, %v1905_v9 }
 0x109   : > { %1408 = vrot.lane.b32.xlu0 %v1376_v32, %s3320_s21  ;;  %3087 = vmatprep.mubr.msk.bf16.mxu0 %vm2208_vm11, %v2169_v1  ;;  %v758_v52 = vpop.permute.xlu1 %757 }
 0x10a   : > { %v1944_v20 = vsel %vm1924_vm3, %v3727_v24, %v758_v52 }
 0x10b   : > { %v1907_v17 = vpop.permute.xlu0 %1906  ;;  %1522 = vrot.lane.b32.xlu1 %v2995_v34, %s3324_s29  ;;  %v1891_v34 = vsel %vm819_vm0, %v1889_v21, %v1890_v40 }
 0x10c   : > { %v2171_v43 = vsel %vm2155_vm10, %v2138_v41, %v1907_v17 }
 0x10d   : > { %1520 = vrot.lane.b32.xlu0 %v2994_v42, %s3324_s29  ;;  %3088 = vmatmul.mubr.msk.bf16.gmra.mrb[12].mxu0 %vm2208_vm11, %v2171_v43  ;;  %v887_v36 = vpop.permute.xlu1 %886 }
 0x10e   : > { %v1977_v32 = vsel %vm1957_vm4, %v1944_v20, %v887_v36 }
 0x10f   : > { %v885_v45 = vpop.permute.xlu0 %884  ;;  %1794 = vrot.lane.b32.xlu1 %v1763_v2, %s3325_s30 }
 0x110   : > { %v1975_v56 = vsel %vm1957_vm4, %v1942_v46, %v885_v45 }
 0x111   : > { %1792 = vrot.lane.b32.xlu0 %v1751_v28, %s3325_s30  ;;  %v999_v42 = vpop.permute.xlu1 %998 }
 0x112   : > { %v2010_v6 = vsel %vm1990_vm5, %v1977_v32, %v999_v42 }
 0x113   : > { %v997_v49 = vpop.permute.xlu0 %996  ;;  %1922 = vrot.lane.b32.xlu1 %v1891_v34, %s3326_s4 }
 0x114   : > { %v2008_v60 = vsel %vm1990_vm5, %v1975_v56, %v997_v49 }
 0x115   : > { %1920 = vrot.lane.b32.xlu0 %v1888_v33, %s3326_s4  ;;  %v1271_v39 = vpop.permute.xlu1 %1270 }
 0x116   : > { %v2043_v25 = vsel %vm2023_vm6, %v2010_v6, %v1271_v39 }
 0x117   : > { %v1269_v19 = vpop.permute.xlu0 %1268 }
 0x118   : > { %v2041_v31 = vsel %vm2023_vm6, %v2008_v60, %v1269_v19 }
 0x119   : > { %v1399_v61 = vpop.permute.xlu1 %1398 }
 0x11a   : > { %v2076_v63 = vsel %vm2056_vm7, %v2043_v25, %v1399_v61 }
 0x11b   : > { %v1397_v10 = vpop.permute.xlu0 %1396 }
 0x11c   : > { %v2074_v13 = vsel %vm2056_vm7, %v2041_v31, %v1397_v10 }
 0x11d   : > { %v1511_v54 = vpop.permute.xlu1 %1510 }
 0x11e   : > { %v2109_v24 = vsel %vm2089_vm8, %v2076_v63, %v1511_v54 }
 0x11f   : > { %v1509_v44 = vpop.permute.xlu0 %1508 }
 0x120   : > { %v2107_v3 = vsel %vm2089_vm8, %v2074_v13, %v1509_v44 }
 0x121   : > { %v1783_v23 = vpop.permute.xlu1 %1782 }
 0x122   : > { %v2142_v53 = vsel %vm2122_vm9, %v2109_v24, %v1783_v23 }
 0x123   : > { %v1781_v55 = vpop.permute.xlu0 %1780 }
 0x124   : > { %v2140_v50 = vsel %vm2122_vm9, %v2107_v3, %v1781_v55 }
 0x125   : > { %v760_v5 = vpop.permute.xlu1 %759 }
 0x126   : > { %v1946_v12 = vsel %vm1924_vm3, %v3853_v7, %v760_v5 }
 0x127   : > { %v1909_v14 = vpop.permute.xlu0 %1908 }
 0x128   : > { %v2173_v27 = vsel %vm2155_vm10, %v2140_v50, %v1909_v14 }
 0x129   : > { %3091 = vmatprep.mubr.msk.bf16.mxu1 %vm2208_vm11, %v2173_v27  ;;  %v762_v59 = vpop.permute.xlu1 %761 }
 0x12a   : > { %v1948_v17 = vsel %vm1924_vm3, %v3877_v38, %v762_v59 }
 0x12b   : > { %v1911_v16 = vpop.permute.xlu0 %1910 }
 0x12c   : > { %v2175_v15 = vsel %vm2155_vm10, %v2142_v53, %v1911_v16 }
 0x12d   : > { %3092 = vmatmul.mubr.msk.bf16.vlgmr.msra.gmra.mrb[0].mxu1 %vm2208_vm11, %v2175_v15  ;;  %v891_v29 = vpop.permute.xlu1 %890 }
 0x12e   : > { %v1981_v2 = vsel %vm1957_vm4, %v1948_v17, %v891_v29 }
 0x12f   : > { %v889_v37 = vpop.permute.xlu0 %888 }
 0x130   : > { %v1979_v52 = vsel %vm1957_vm4, %v1946_v12, %v889_v37 }
 0x131   : > { %v1003_v9 = vpop.permute.xlu1 %1002 }
 0x132   : > { %v2014_v7 = vsel %vm1990_vm5, %v1981_v2, %v1003_v9 }
 0x133   : > { %v1001_v51 = vpop.permute.xlu0 %1000 }
 0x134   : > { %v2012_v48 = vsel %vm1990_vm5, %v1979_v52, %v1001_v51 }
 0x135   : > { %v1275_v35 = vpop.permute.xlu1 %1274 }
 0x136   : > { %v2047_v26 = vsel %vm2023_vm6, %v2014_v7, %v1275_v35 }
 0x137   : > { %v1273_v1 = vpop.permute.xlu0 %1272 }
 0x138   : > { %v2045_v41 = vsel %vm2023_vm6, %v2012_v48, %v1273_v1 }
 0x139   : > { %v1403_v30 = vpop.permute.xlu1 %1402 }
 0x13a   : > { %v2080_v45 = vsel %vm2056_vm7, %v2047_v26, %v1403_v30 }
 0x13b   : > { %v1401_v57 = vpop.permute.xlu0 %1400 }
 0x13c   : > { %v2078_v43 = vsel %vm2056_vm7, %v2045_v41, %v1401_v57 }
 0x13d   : > { %v1515_v58 = vpop.permute.xlu1 %1514 }
 0x13e   : > { %v2113_v38 = vsel %vm2089_vm8, %v2080_v45, %v1515_v58 }
 0x13f   : > { %v1513_v22 = vpop.permute.xlu0 %1512 }
 0x140   : > { %v2111_v21 = vsel %vm2089_vm8, %v2078_v43, %v1513_v22 }
 0x141   : > { %v1787_v0 = vpop.permute.xlu1 %1786 }
 0x142   : > { %v2146_v42 = vsel %vm2122_vm9, %v2113_v38, %v1787_v0 }
 0x143   : > { %v1785_v18 = vpop.permute.xlu0 %1784 }
 0x144   : > { %v2144_v36 = vsel %vm2122_vm9, %v2111_v21, %v1785_v18 }
 0x145   : > { %v764_v40 = vpop.permute.xlu1 %763 }
 0x146   : > { %v1950_v55 = vsel %vm1924_vm3, %v4001_v11, %v764_v40 }
 0x147   : > { %v1913_v28 = vpop.permute.xlu0 %1912 }
 0x148   : > { %v2177_v4 = vsel %vm2155_vm10, %v2144_v36, %v1913_v28 }
 0x149   : > { %3095 = vmatprep.mubr.msk.bf16.mxu1 %vm2208_vm11, %v2177_v4  ;;  %v766_v34 = vpop.permute.xlu1 %765 }
 0x14a   : > { %v1952_v5 = vsel %vm1924_vm3, %v4030_v8, %v766_v34 }
 0x14b   : > { %v1915_v33 = vpop.permute.xlu0 %1914 }
 0x14c   : > { %v2179_v49 = vsel %vm2155_vm10, %v2146_v42, %v1915_v33 }
 0x14d   : > { %3096 = vmatmul.mubr.msk.bf16.gmra.mrb[4].mxu1 %vm2208_vm11, %v2179_v49  ;;  %v895_v39 = vpop.permute.xlu1 %894 }
 0x14e   : > { %v1985_v50 = vsel %vm1957_vm4, %v1952_v5, %v895_v39 }
 0x14f   : > { %v893_v19 = vpop.permute.xlu0 %892 }
 0x150   : > { %v1983_v31 = vsel %vm1957_vm4, %v1950_v55, %v893_v19 }
 0x151   : > { %v1007_v61 = vpop.permute.xlu1 %1006 }
 0x152   : > { %v2018_v11 = vsel %vm1990_vm5, %v1985_v50, %v1007_v61 }
 0x153   : > { %v1005_v10 = vpop.permute.xlu0 %1004 }
 0x154   : > { %v2016_v13 = vsel %vm1990_vm5, %v1983_v31, %v1005_v10 }
 0x155   : > { %v1279_v54 = vpop.permute.xlu1 %1278 }
 0x156   : > { %v2051_v24 = vsel %vm2023_vm6, %v2018_v11, %v1279_v54 }
 0x157   : > { %v1277_v44 = vpop.permute.xlu0 %1276 }
 0x158   : > { %v2049_v3 = vsel %vm2023_vm6, %v2016_v13, %v1277_v44 }
 0x159   : > { %v1407_v46 = vpop.permute.xlu1 %1406 }
 0x15a   : > { %v2084_v53 = vsel %vm2056_vm7, %v2051_v24, %v1407_v46 }
 0x15b   : > { %v1405_v56 = vpop.permute.xlu0 %1404 }
 0x15c   : > { %v2082_v6 = vsel %vm2056_vm7, %v2049_v3, %v1405_v56 }
 0x15d   : > { %v1519_v23 = vpop.permute.xlu1 %1518 }
 0x15e   : > { %v2117_v8 = vsel %vm2089_vm8, %v2084_v53, %v1519_v23 }
 0x15f   : > { %v1517_v60 = vpop.permute.xlu0 %1516 }
 0x160   : > { %v2115_v14 = vsel %vm2089_vm8, %v2082_v6, %v1517_v60 }
 0x161   : > { %v1791_v20 = vpop.permute.xlu1 %1790 }
 0x162   : > { %v2150_v15 = vsel %vm2122_vm9, %v2117_v8, %v1791_v20 }
 0x163   : > { %v1789_v32 = vpop.permute.xlu0 %1788 }
 0x164   : > { %v2148_v27 = vsel %vm2122_vm9, %v2115_v14, %v1789_v32 }
 0x165   : > { %v768_v25 = vpop.permute.xlu1 %767 }
 0x166   : > { %v1954_v18 = vsel %vm1924_vm3, %v4154_v62, %v768_v25 }
 0x167   : > { %v1917_v63 = vpop.permute.xlu0 %1916 }
 0x168   : > { %v2181_v59 = vsel %vm2155_vm10, %v2148_v27, %v1917_v63 }
 0x169   : > { %3099 = vmatprep.mubr.msk.bf16.mxu1 %vm2208_vm11, %v2181_v59  ;;  %v770_v16 = vpop.permute.xlu1 %769 }
 0x16a   : > { %v1956_v0 = vsel %vm1924_vm3, %v4183_v47, %v770_v16 }
 0x16b   : > { %v1919_v29 = vpop.permute.xlu0 %1918 }
 0x16c   : > { %v2183_v37 = vsel %vm2155_vm10, %v2150_v15, %v1919_v29 }
 0x16d   : > { %3100 = vmatmul.mubr.msk.bf16.gmra.mrb[8].mxu1 %vm2208_vm11, %v2183_v37  ;;  %v899_v9 = vpop.permute.xlu1 %898 }
 0x16e   : > { %v1989_v41 = vsel %vm1957_vm4, %v1956_v0, %v899_v9 }
 0x16f   : > { %v897_v51 = vpop.permute.xlu0 %896 }
 0x170   : > { %v1987_v43 = vsel %vm1957_vm4, %v1954_v18, %v897_v51 }
 0x171   : > { %v1011_v35 = vpop.permute.xlu1 %1010 }
 0x172   : > { %v2022_v2 = vsel %vm1990_vm5, %v1989_v41, %v1011_v35 }
 0x173   : > { %v1009_v1 = vpop.permute.xlu0 %1008 }
 0x174   : > { %v2020_v47 = vsel %vm1990_vm5, %v1987_v43, %v1009_v1 }
 0x175   : > { %v1283_v30 = vpop.permute.xlu1 %1282 }
 0x176   : > { %v2055_v7 = vsel %vm2023_vm6, %v2022_v2, %v1283_v30 }
 0x177   : > { %v1281_v57 = vpop.permute.xlu0 %1280 }
 0x178   : > { %v2053_v28 = vsel %vm2023_vm6, %v2020_v47, %v1281_v57 }
 0x179   : > { %v1411_v58 = vpop.permute.xlu1 %1410 }
 0x17a   : > { %v2088_v26 = vsel %vm2056_vm7, %v2055_v7, %v1411_v58 }
 0x17b   : > { %v1409_v22 = vpop.permute.xlu0 %1408 }
 0x17c   : > { %v2086_v45 = vsel %vm2056_vm7, %v2053_v28, %v1409_v22 }
 0x17d   : > { %v1523_v12 = vpop.permute.xlu1 %1522 }
 0x17e   : > { %v2121_v38 = vsel %vm2089_vm8, %v2088_v26, %v1523_v12 }
 0x17f   : > { %v1521_v52 = vpop.permute.xlu0 %1520 }
 0x180   : > { %v4404_v48 = vpop.f32.mrb[0].mxu0  ;;  %v2119_v34 = vsel %vm2089_vm8, %v2086_v45, %v1521_v52 }
 0x181   : > { %v4409_v17 = vpop.f32.mrb[1].mxu0  ;;  %v1795_v40 = vpop.permute.xlu1 %1794 }
 0x182   : > { %v4413_v21 = vpop.f32.mrb[2].mxu0  ;;  %2549 = vxpose.xlu0.b32.start [1/16] (narrow) %v4409_v17, 8  ;;  %v2154_v42 = vsel %vm2122_vm9, %v2121_v38, %v1795_v40 }
 0x183   : > { %v4418_v36 = vpop.f32.mrb[3].mxu0  ;;  %v1793_v62 = vpop.permute.xlu0 %1792 }
 0x184   : > { %v2406_v4 = vadd.f32 %v4418_v36, %v4409_v17  ;;  %v2152_v39 = vsel %vm2122_vm9, %v2119_v34, %v1793_v62 }
 0x185   : > { %v1923_v49 = vpop.permute.xlu1 %1922 }
 0x186   : > { %v2407_v33 = vadd.f32 %v4404_v48, %v2406_v4  ;;  %2550 = vxpose.xlu0.b32.cont [2/16] (narrow) %v4418_v36, 8  ;;  %v2187_v19 = vsel %vm2155_vm10, %v2154_v42, %v1923_v49 }
 0x187   : > { %v1921_v61 = vpop.permute.xlu0 %1920 }
 0x188   : > { %v2185_v10 = vsel %vm2155_vm10, %v2152_v39, %v1921_v61  ;;  %v2408_v54 = vadd.f32 %v4413_v21, %v2407_v33 }
 0x189   : > { %3103 = vmatprep.mubr.msk.bf16.mxu1 %vm2208_vm11, %v2185_v10 }
 0x18a   : > { %2551 = vxpose.xlu0.b32.cont [3/16] (narrow) %v4404_v48, 8  ;;  %3104 = vmatmul.mubr.msk.bf16.gmra.mrb[12].mxu1 %vm2208_vm11, %v2187_v19 }
 0x18e   : > { %2552 = vxpose.xlu0.b32.cont [4/16] (narrow) %v4413_v21, 8 }
 0x1a0   : > { %v4438_v44 = vpop.f32.mrb[4].mxu0 }
 0x1a1   : > { %v4440_v46 = vpop.f32.mrb[5].mxu0 }
 0x1a2   : > { %v2409_v56 = vadd.f32 %v2408_v54, %v4440_v46  ;;  %2553 = vxpose.xlu0.b32.cont [5/16] (narrow) %v4440_v46, 8  ;;  %v4444_v23 = vpop.f32.mrb[6].mxu0 }
 0x1a3   : > { %v4446_v60 = vpop.f32.mrb[7].mxu0 }
 0x1a4   : > { %v2410_v55 = vadd.f32 %v2409_v56, %v4446_v60 }
 0x1a6   : > { %v2411_v31 = vadd.f32 %v4438_v44, %v2410_v55  ;;  %2554 = vxpose.xlu0.b32.cont [6/16] (narrow) %v4446_v60, 8 }
 0x1a8   : > { %v2412_v20 = vadd.f32 %v4444_v23, %v2411_v31 }
 0x1aa   : > { %2555 = vxpose.xlu0.b32.cont [7/16] (narrow) %v4438_v44, 8 }
 0x1ae   : > { %2556 = vxpose.xlu0.b32.cont [8/16] (narrow) %v4444_v23, 8 }
 0x1c0   : > { %v4454_v13 = vpop.f32.mrb[8].mxu0 }
 0x1c1   : > { %v4456_v32 = vpop.f32.mrb[9].mxu0 }
 0x1c2   : > { %v2413_v3 = vadd.f32 %v2412_v20, %v4456_v32  ;;  %2557 = vxpose.xlu0.b32.cont [9/16] (narrow) %v4456_v32, 8  ;;  %v4460_v5 = vpop.f32.mrb[10].mxu0 }
 0x1c3   : > { %v4462_v6 = vpop.f32.mrb[11].mxu0 }
 0x1c4   : > { %v2414_v50 = vadd.f32 %v2413_v3, %v4462_v6 }
 0x1c6   : > { %v2415_v14 = vadd.f32 %v4454_v13, %v2414_v50  ;;  %2558 = vxpose.xlu0.b32.cont [10/16] (narrow) %v4462_v6, 8 }
 0x1c8   : > { %v2416_v25 = vadd.f32 %v4460_v5, %v2415_v14 }
 0x1ca   : > { %2559 = vxpose.xlu0.b32.cont [11/16] (narrow) %v4454_v13, 8 }
 0x1ce   : > { %2560 = vxpose.xlu0.b32.cont [12/16] (narrow) %v4460_v5, 8 }
 0x1e0   : > { %v4470_v11 = vpop.f32.mrb[12].mxu0 }
 0x1e1   : > { %v4472_v27 = vpop.f32.mrb[13].mxu0 }
 0x1e2   : > { %v2417_v63 = vadd.f32 %v2416_v25, %v4472_v27  ;;  %2561 = vxpose.xlu0.b32.cont [13/16] (narrow) %v4472_v27, 8  ;;  %v4476_v24 = vpop.f32.mrb[14].mxu0 }
 0x1e3   : > { %v4478_v59 = vpop.f32.mrb[15].mxu0 }
 0x1e4   : > { %v2418_v53 = vadd.f32 %v2417_v63, %v4478_v59 }
 0x1e6   : > { %v2419_v8 = vadd.f32 %v4470_v11, %v2418_v53  ;;  %2562 = vxpose.xlu0.b32.cont [14/16] (narrow) %v4478_v59, 8 }
 0x1e8   : > { %v2420_v16 = vadd.f32 %v4476_v24, %v2419_v8 }
 0x1ea   : > { %2563 = vxpose.xlu0.b32.cont [15/16] (narrow) %v4470_v11, 8 }
 0x1ee   : > { %2564 = vxpose.xlu0.b32.end [16/16] (narrow) %v4476_v24, 8 }
 0x200   : > { %v4486_v15 = vpop.f32.mrb[0].mxu1 }
 0x201   : > { %v4488_v29 = vpop.f32.mrb[1].mxu1 }
 0x202   : > { %v2421_v37 = vadd.f32 %v2420_v16, %v4488_v29  ;;  %2581 = vxpose.xlu1.b32.start [1/16] (narrow) %v4488_v29, 8  ;;  %v4492_v9 = vpop.f32.mrb[2].mxu1 }
 0x203   : > { %v4494_v51 = vpop.f32.mrb[3].mxu1 }
 0x204   : > { %v2422_v35 = vadd.f32 %v2421_v37, %v4494_v51 }
 0x206   : > { %v2423_v1 = vadd.f32 %v4486_v15, %v2422_v35  ;;  %2582 = vxpose.xlu1.b32.cont [2/16] (narrow) %v4494_v51, 8 }
 0x208   : > { %v2424_v30 = vadd.f32 %v4492_v9, %v2423_v1 }
 0x20a   : > { %2583 = vxpose.xlu1.b32.cont [3/16] (narrow) %v4486_v15, 8 }
 0x20e   : > { %2584 = vxpose.xlu1.b32.cont [4/16] (narrow) %v4492_v9, 8 }
 0x220   : > { %v4502_v57 = vpop.f32.mrb[4].mxu1 }
 0x221   : > { %v4504_v58 = vpop.f32.mrb[5].mxu1 }
 0x222   : > { %v2425_v22 = vadd.f32 %v2424_v30, %v4504_v58  ;;  %2585 = vxpose.xlu1.b32.cont [5/16] (narrow) %v4504_v58, 8  ;;  %v4508_v12 = vpop.f32.mrb[6].mxu1 }
 0x223   : > { %v4510_v52 = vpop.f32.mrb[7].mxu1 }
 0x224   : > { %v2426_v0 = vadd.f32 %v2425_v22, %v4510_v52 }
 0x226   : > { %v2427_v18 = vadd.f32 %v4502_v57, %v2426_v0  ;;  %2586 = vxpose.xlu1.b32.cont [6/16] (narrow) %v4510_v52, 8 }
 0x228   : > { %v2428_v41 = vadd.f32 %v4508_v12, %v2427_v18 }
 0x22a   : > { %2587 = vxpose.xlu1.b32.cont [7/16] (narrow) %v4502_v57, 8 }
 0x22e   : > { %2588 = vxpose.xlu1.b32.cont [8/16] (narrow) %v4508_v12, 8 }
 0x232   : > { %v2565_v4 = vpop.trf.xlu0 }
 0x233   : > { %2613 = vst [vmem:[%s4538_s10] sm:$0xff] %v2565_v4 }
 0x240   : > { %v4518_v43 = vpop.f32.mrb[8].mxu1 }
 0x241   : > { %v4520_v2 = vpop.f32.mrb[9].mxu1 }
 0x242   : > { %v2429_v40 = vadd.f32 %v2428_v41, %v4520_v2  ;;  %2589 = vxpose.xlu1.b32.cont [9/16] (narrow) %v4520_v2, 8  ;;  %v4524_v47 = vpop.f32.mrb[10].mxu1 }
 0x243   : > { %v4526_v7 = vpop.f32.mrb[11].mxu1 }
 0x244   : > { %v2430_v62 = vadd.f32 %v2429_v40, %v4526_v7 }
 0x246   : > { %v2431_v28 = vadd.f32 %v4518_v43, %v2430_v62  ;;  %2590 = vxpose.xlu1.b32.cont [10/16] (narrow) %v4526_v7, 8 }
 0x248   : > { %v2432_v26 = vadd.f32 %v4524_v47, %v2431_v28 }
 0x24a   : > { %2591 = vxpose.xlu1.b32.cont [11/16] (narrow) %v4518_v43, 8 }
 0x24e   : > { %2592 = vxpose.xlu1.b32.cont [12/16] (narrow) %v4524_v47, 8 }
 0x25d   : > { %v4541_v45 = vpop.f32.mrb[12].mxu1 }
 0x25e   : > { %v4543_v38 = vpop.f32.mrb[13].mxu1 }
 0x25f   : > { %v2433_v34 = vadd.f32 %v2432_v26, %v4543_v38  ;;  %2593 = vxpose.xlu1.b32.cont [13/16] (narrow) %v4543_v38, 8  ;;  %v4547_v42 = vpop.f32.mrb[14].mxu1 }
 0x260   : > { %v4549_v33 = vpop.f32.mrb[15].mxu1 }
 0x261   : > { %v2434_v49 = vadd.f32 %v2433_v34, %v4549_v33 }
 0x263   : > { %v2435_v39 = vadd.f32 %v4541_v45, %v2434_v49  ;;  %2594 = vxpose.xlu1.b32.cont [14/16] (narrow) %v4549_v33, 8 }
 0x265   : > { %v2436_v19 = vadd.f32 %v4547_v42, %v2435_v39 }
 0x267   : > { %v2437_v61 = vrot.slane %v2436_v19, 4  ;;  %2595 = vxpose.xlu1.b32.cont [15/16] (narrow) %v4541_v45, 8 }
 0x269   : > { %v2438_v10 = vadd.f32 %v2437_v61, %v2436_v19 }
 0x26b   : > { %v2439_v54 = vrot.slane %v2438_v10, 2  ;;  %2596 = vxpose.xlu1.b32.end [16/16] (narrow) %v4547_v42, 8 }
 0x26d   : > { %v2440_v56 = vadd.f32 %v2439_v54, %v2438_v10 }
 0x26f   : > { %v2441_v55 = vrot.slane %v2440_v56, 1 }
 0x271   : > { %v4557_v31 = vadd.f32 %v2441_v55, %v2440_v56 }
 0x273   : > { %v4560_v20 = vmul.f32 0.00390625, %v4557_v31 }
 0x275   : > { %v2444_v3 = vsub.f32 %v4409_v17, %v4560_v20  ;;  %v2445_v50 = vsub.f32 %v4418_v36, %v4560_v20  ;;  %v2446_v14 = vsub.f32 %v4404_v48, %v4560_v20  ;;  %v2447_v53 = vsub.f32 %v4413_v21, %v4560_v20 }
 0x276   : > { %v2448_v8 = vsub.f32 %v4440_v46, %v4560_v20  ;;  %v2449_v35 = vsub.f32 %v4446_v60, %v4560_v20  ;;  %v2450_v36 = vsub.f32 %v4438_v44, %v4560_v20  ;;  %v2451_v22 = vsub.f32 %v4444_v23, %v4560_v20 }
 0x277   : > { %v2476_v25 = vmul.f32 %v2444_v3, %v2444_v3  ;;  %v2477_v63 = vmul.f32 %v2445_v50, %v2445_v50  ;;  %v2478_v16 = vmul.f32 %v2446_v14, %v2446_v14  ;;  %v2479_v17 = vmul.f32 %v2447_v53, %v2447_v53 }
 0x278   : > { %v2480_v30 = vmul.f32 %v2448_v8, %v2448_v8  ;;  %v2481_v0 = vmul.f32 %v2449_v35, %v2449_v35  ;;  %v2452_v46 = vsub.f32 %v4456_v32, %v4560_v20  ;;  %v2482_v18 = vmul.f32 %v2450_v36, %v2450_v36 }
 0x279   : > { %v2508_v37 = vadd.f32 %v2477_v63, %v2476_v25  ;;  %v2453_v60 = vsub.f32 %v4462_v6, %v4560_v20  ;;  %v2483_v40 = vmul.f32 %v2451_v22, %v2451_v22  ;;  %v2454_v44 = vsub.f32 %v4454_v13, %v4560_v20 }
 0x27a   : > { %v2484_v28 = vmul.f32 %v2452_v46, %v2452_v46  ;;  %v2455_v23 = vsub.f32 %v4460_v5, %v4560_v20  ;;  %v2456_v32 = vsub.f32 %v4472_v27, %v4560_v20  ;;  %v2457_v6 = vsub.f32 %v4478_v59, %v4560_v20 }
 0x27b   : > { %v2509_v1 = vadd.f32 %v2508_v37, %v2478_v16  ;;  %v2485_v4 = vmul.f32 %v2453_v60, %v2453_v60  ;;  %v2486_v49 = vmul.f32 %v2454_v44, %v2454_v44  ;;  %v2458_v13 = vsub.f32 %v4470_v11, %v4560_v20 }
 0x27c   : > { %v2487_v19 = vmul.f32 %v2455_v23, %v2455_v23  ;;  %v2488_v10 = vmul.f32 %v2456_v32, %v2456_v32  ;;  %v2459_v5 = vsub.f32 %v4476_v24, %v4560_v20  ;;  %v2489_v56 = vmul.f32 %v2457_v6, %v2457_v6 }
 0x27d   : > { %v2510_v48 = vadd.f32 %v2509_v1, %v2479_v17  ;;  %v2460_v27 = vsub.f32 %v4488_v29, %v4560_v20  ;;  %v2490_v3 = vmul.f32 %v2458_v13, %v2458_v13  ;;  %v2461_v59 = vsub.f32 %v4494_v51, %v4560_v20 }
 0x27e   : > { %v2491_v14 = vmul.f32 %v2459_v5, %v2459_v5  ;;  %v2462_v11 = vsub.f32 %v4486_v15, %v4560_v20  ;;  %v2463_v24 = vsub.f32 %v4492_v9, %v4560_v20  ;;  %v2464_v29 = vsub.f32 %v4504_v58, %v4560_v20 }
 0x27f   : > { %v2511_v21 = vadd.f32 %v2510_v48, %v2480_v30  ;;  %v2492_v63 = vmul.f32 %v2460_v27, %v2460_v27  ;;  %v2493_v8 = vmul.f32 %v2461_v59, %v2461_v59  ;;  %v2465_v51 = vsub.f32 %v4510_v52, %v4560_v20 }
 0x280   : > { %v2494_v37 = vmul.f32 %v2462_v11, %v2462_v11  ;;  %v2495_v17 = vmul.f32 %v2463_v24, %v2463_v24  ;;  %v2466_v15 = vsub.f32 %v4502_v57, %v4560_v20  ;;  %v2496_v36 = vmul.f32 %v2464_v29, %v2464_v29 }
 0x281   : > { %v2512_v41 = vadd.f32 %v2511_v21, %v2481_v0  ;;  %v2467_v9 = vsub.f32 %v4508_v12, %v4560_v20  ;;  %v2497_v48 = vmul.f32 %v2465_v51, %v2465_v51  ;;  %v2468_v58 = vsub.f32 %v4520_v2, %v4560_v20 }
 0x282   : > { %v2498_v0 = vmul.f32 %v2466_v15, %v2466_v15  ;;  %v2469_v52 = vsub.f32 %v4526_v7, %v4560_v20  ;;  %v2470_v57 = vsub.f32 %v4518_v43, %v4560_v20  ;;  %v2471_v12 = vsub.f32 %v4524_v47, %v4560_v20 }
 0x283   : > { %v2513_v62 = vadd.f32 %v2512_v41, %v2482_v18  ;;  %v2499_v46 = vmul.f32 %v2467_v9, %v2467_v9  ;;  %v2500_v60 = vmul.f32 %v2468_v58, %v2468_v58  ;;  %v2472_v2 = vsub.f32 %v4543_v38, %v4560_v20 }
 0x284   : > { %v2473_v7 = vsub.f32 %v4549_v33, %v4560_v20  ;;  %v2503_v23 = vmul.f32 %v2471_v12, %v2471_v12  ;;  %v2474_v43 = vsub.f32 %v4541_v45, %v4560_v20  ;;  %v2475_v47 = vsub.f32 %v4547_v42, %v4560_v20 }
 0x285   : > { %v2514_v26 = vadd.f32 %v2513_v62, %v2483_v40  ;;  %v2501_v62 = vmul.f32 %v2469_v52, %v2469_v52 }
 0x286   : > { %v2506_v6 = vmul.f32 %v2474_v43, %v2474_v43 }
 0x287   : > { %v2515_v34 = vadd.f32 %v2514_v26, %v2484_v28  ;;  %v2502_v28 = vmul.f32 %v2470_v57, %v2470_v57 }
 0x289   : > { %v2516_v39 = vadd.f32 %v2515_v34, %v2485_v4  ;;  %v2504_v34 = vmul.f32 %v2472_v2, %v2472_v2 }
 0x28b   : > { %v2517_v61 = vadd.f32 %v2516_v39, %v2486_v49  ;;  %v2505_v49 = vmul.f32 %v2473_v7, %v2473_v7 }
 0x28d   : > { %v2518_v54 = vadd.f32 %v2517_v61, %v2487_v19  ;;  %v2507_v19 = vmul.f32 %v2475_v47, %v2475_v47 }
 0x28f   : > { %v2519_v55 = vadd.f32 %v2518_v54, %v2488_v10 }
 0x291   : > { %v2520_v50 = vadd.f32 %v2519_v55, %v2489_v56 }
 0x293   : > { %v2521_v25 = vadd.f32 %v2520_v50, %v2490_v3 }
 0x295   : > { %v2522_v53 = vadd.f32 %v2521_v25, %v2491_v14 }
 0x297   : > { %v2523_v16 = vadd.f32 %v2522_v53, %v2492_v63 }
 0x299   : > { %v2524_v35 = vadd.f32 %v2523_v16, %v2493_v8 }
 0x29b   : > { %v2525_v1 = vadd.f32 %v2524_v35, %v2494_v37 }
 0x29d   : > { %v2526_v30 = vadd.f32 %v2525_v1, %v2495_v17 }
 0x29f   : > { %v2527_v22 = vadd.f32 %v2526_v30, %v2496_v36 }
 0x2a1   : > { %v2528_v21 = vadd.f32 %v2527_v22, %v2497_v48 }
 0x2a3   : > { %v2529_v18 = vadd.f32 %v2528_v21, %v2498_v0 }
 0x2a5   : > { %v2530_v40 = vadd.f32 %v2529_v18, %v2499_v46 }
 0x2a7   : > { %v2531_v44 = vadd.f32 %v2530_v40, %v2500_v60 }
 0x2a9   : > { %v2532_v26 = vadd.f32 %v2531_v44, %v2501_v62 }
 0x2ab   : > { %v2533_v4 = vadd.f32 %v2532_v26, %v2502_v28 }
 0x2ad   : > { %v2534_v32 = vadd.f32 %v2533_v4, %v2503_v23 }
 0x2af   : > { %v2597_v41 = vpop.trf.xlu1  ;;  %v2535_v39 = vadd.f32 %v2534_v32, %v2504_v34 }
 0x2b0   : > { %2614 = vst [vmem:[%s4538_s10 + $0x8] sm:$0xff] %v2597_v41 }
 0x2b1   : > { %v2536_v38 = vadd.f32 %v2535_v39, %v2505_v49 }
 0x2b3   : > { %v2537_v61 = vadd.f32 %v2536_v38, %v2506_v6 }
 0x2b5   : > { %v2538_v13 = vadd.f32 %v2537_v61, %v2507_v19 }
 0x2b7   : > { %v2539_v10 = vrot.slane %v2538_v13, 4 }
 0x2b9   : > { %v2540_v33 = vadd.f32 %v2539_v10, %v2538_v13 }
 0x2bb   : > { %v2541_v54 = vrot.slane %v2540_v33, 2 }
 0x2bd   : > { %v2542_v5 = vadd.f32 %v2541_v54, %v2540_v33 }
 0x2bf   : > { %v2543_v56 = vrot.slane %v2542_v5, 1 }
 0x2c1   : > { %v2544_v45 = vadd.f32 %v2543_v56, %v2542_v5 }
 0x2c3   : > { %v2546_v42 = vsel %vm2545_vm12, %v4557_v31, %v2544_v45 }
 0x2c4   : > { %v2547_v20 = vsel %vm2241_vm2, %v2546_v42, 0.0 }
 0x2c5   : > { %2548 = vst [vmem:[%s212_s18] sm:$0xff] %v2547_v20 }
 0x2c6 PF: > { %s14_s14 = sadd.s32 1, %s3317_s14   ;;  %s4646_s12 = smov %s3313_s13 }
 0x2c7   : > { %p11_p5 = scmp.ge.s32.totalorder %s14_s14, 4   ;;  %s4647_s13 = smov %s4649_s15 }
 0x2c9   :  { %13 = sbr.rel (!%p11_p5) target bundleno = 2 (0x2), region = 73 }

</bundles_post_ra>
